<compile_context>
chip_gen: v7x
topology: tpu7x:2x2x1
jax: 0.10.0
libtpu: 0.0.40
codegen_flags: <defaults>
</compile_context>

<pallas_src>
import numpy as np
import jax
import jax.numpy as jnp
from jax import lax
from jax.experimental import pallas as pl
from jax.experimental.pallas import tpu as pltpu


# -----------------------------------------------------------------------------
# Trace-time helpers (plain numpy / XLA layout plumbing — no kernel compute).
# -----------------------------------------------------------------------------
def _im2col(x, kh, kw):
    """(B, C, H, W) -> (B, C*kh*kw, Ho*Wo) patch matrix for a VALID conv."""
    B, C, H, W = x.shape
    Ho, Wo = H - kh + 1, W - kw + 1
    taps = []
    for dh in range(kh):
        for dw in range(kw):
            taps.append(x[:, :, dh:dh + Ho, dw:dw + Wo].reshape(B, C, Ho * Wo))
    cols = jnp.stack(taps, axis=2)            # (B, C, kh*kw, Ho*Wo)
    return cols.reshape(B, C * kh * kw, Ho * Wo)


def _shift_select(H, W, kh, kw):
    """Constant 0/1 matrices S[t] of shape (H*W, Ho*Wo).

    Right-multiplying a (C, H*W) feature map by S[t] (t = dh*kw + dw) selects, for
    every VALID output position (h, w), the input column (h+dh)*W + (w+dw) — i.e.
    an exact shifted-window gather expressed as an MXU matmul (exact in bf16).
    """
    Ho, Wo = H - kh + 1, W - kw + 1
    S = np.zeros((kh * kw, H * W, Ho * Wo), np.float32)
    for dh in range(kh):
        for dw in range(kw):
            t = dh * kw + dw
            for h in range(Ho):
                for w in range(Wo):
                    S[t, (h + dh) * W + (w + dw), h * Wo + w] = 1.0
    return S


# -----------------------------------------------------------------------------
# Fused SiamFC kernel: one grid step == one batch element, everything in VMEM.
# -----------------------------------------------------------------------------
def _make_siamfc_kernel(n_tap, C2, Ns2, Nt2, No_pad, scale):
    N2 = Ns2 + Nt2          # conv2 output columns: [search | template]
    bf16, f32 = jnp.bfloat16, jnp.float32

    def kernel(cols_ref, w1_ref, b1_ref, w2r_ref, b2_ref, sel_ref, scw_ref, o_ref):
        # ---- layer 1 (both branches fused along the lane axis) ------------------
        y1 = jnp.maximum(
            jnp.dot(w1_ref[...], cols_ref[0], preferred_element_type=f32)
            + b1_ref[...], 0.0).astype(bf16)                      # (C1, N1)

        # ---- layer 2: one tap-stacked weight matmul + 9 aligned selection matmuls
        zr = jnp.dot(w2r_ref[...], y1,
                     preferred_element_type=f32).astype(bf16)     # (9*C2, N1)
        acc = jnp.zeros((C2, N2), f32)
        for t in range(n_tap):                                    # sublane-aligned slabs
            acc = acc + jnp.dot(zr[t * C2:(t + 1) * C2, :], sel_ref[t],
                                preferred_element_type=f32)       # (C2, N2)
        y2 = jnp.maximum(acc + b2_ref[...], 0.0).astype(bf16)     # (C2, N2)
        y2s = y2[:, :Ns2]                                         # (C2, Ns2) search feat
        y2t = y2[:, Ns2:N2]                                       # (C2, Nt2) template feat

        # ---- cross-correlation (template features act as the conv filter) -------
        # P[tt, q] = sum_c2 template[c2, tt] * search[c2, q]
        P = lax.dot_general(y2t, y2s, (((0,), (0,)), ((), ())),
                            preferred_element_type=f32)           # (Nt2, Ns2)
        # One wide selection matmul: template tap tt owns lane block [tt*128, (tt+1)*128)
        big = jnp.dot(P.astype(bf16), scw_ref[...],
                      preferred_element_type=f32)                 # (Nt2, Nt2*No_pad)
        # Keep only row tt of its own lane block, fold blocks (VPU) + reduce rows (XLU)
        rows = lax.broadcasted_iota(jnp.int32, (Nt2, No_pad), 0)  # (Nt2, No_pad)
        folded = jnp.zeros((Nt2, No_pad), f32)
        for tt in range(Nt2):
            blkv = big[:, tt * No_pad:(tt + 1) * No_pad]          # aligned 128-lane slab
            folded = folded + jnp.where(rows == tt, blkv, 0.0)
        out_row = scale * jnp.sum(folded, axis=0, keepdims=True)  # (1, No_pad)
        o_ref[0] = out_row.astype(f32)

    return kernel


def siamfc_forward(params, search, template, scale=1e-3):
    w1, b1 = params["w1"], params["b1"]
    w2, b2 = params["w2"], params["b2"]
    B, C_in, Hs, Ws = search.shape
    _, _, Ht, Wt = template.shape
    C1, _, kh, kw = w1.shape
    C2 = w2.shape[0]

    # Static spatial sizes through the network (VALID convs).
    Hs1, Ws1 = Hs - kh + 1, Ws - kw + 1
    Hs2, Ws2 = Hs1 - kh + 1, Ws1 - kw + 1
    Ht1, Wt1 = Ht - kh + 1, Wt - kw + 1
    Ht2, Wt2 = Ht1 - kh + 1, Wt1 - kw + 1
    Ho, Wo = Hs2 - Ht2 + 1, Ws2 - Wt2 + 1
    K1 = C_in * kh * kw
    Ns1, Nt1 = Hs1 * Ws1, Ht1 * Wt1
    Ns2, Nt2 = Hs2 * Ws2, Ht2 * Wt2
    No = Ho * Wo
    n_tap = kh * kw
    N1 = Ns1 + Nt1
    N2 = Ns2 + Nt2
    No_pad = 128
    assert No <= No_pad, "toy-size kernel assumes the response map fits one lane tile"

    bf16 = jnp.bfloat16

    # ---- wrapper-side layout plumbing (XLA ops, not kernel compute) -------------
    # im2col'd inputs for layer 1, both branches concatenated on the lane axis.
    cols = jnp.concatenate(
        [_im2col(search, kh, kw), _im2col(template, kh, kw)], axis=2).astype(bf16)
    w1m = w1.reshape(C1, K1).astype(bf16)                               # (C1, K1)
    # conv2 weights stacked tap-major: row t*C2 + c2 = w2[c2, :, dh, dw].
    w2row = jnp.transpose(w2, (2, 3, 0, 1)).reshape(n_tap * C2, C1).astype(bf16)
    b1c = b1.reshape(C1, 1).astype(jnp.float32)                         # f32 bias
    b2c = b2.reshape(C2, 1).astype(jnp.float32)

    # conv2 shift-selection constant, block-diagonal over (search | template).
    ss = _shift_select(Hs1, Ws1, kh, kw)                                # (9, Ns1, Ns2)
    st = _shift_select(Ht1, Wt1, kh, kw)                                # (9, Nt1, Nt2)
    sel_np = np.zeros((n_tap, N1, N2), np.float32)
    sel_np[:, :Ns1, :Ns2] = ss
    sel_np[:, Ns1:, Ns2:] = st
    sel = jnp.asarray(sel_np, dtype=bf16)                               # exact 0/1 in bf16

    # cross-correlation selection, widened: lane block tt <- template position tt.
    sc = _shift_select(Hs2, Ws2, Ht2, Wt2)                              # (Nt2, Ns2, No)
    scw_np = np.zeros((Ns2, Nt2 * No_pad), np.float32)
    for tt in range(Nt2):
        scw_np[:, tt * No_pad:tt * No_pad + No] = sc[tt]
    scw = jnp.asarray(scw_np, dtype=bf16)

    def rep2(shape):   # batch-invariant 2-D operand, full-array block
        return pl.BlockSpec(shape, lambda b: (0, 0))

    def rep3(shape):   # batch-invariant 3-D operand, full-array block
        return pl.BlockSpec(shape, lambda b: (0, 0, 0))

    kernel = _make_siamfc_kernel(n_tap, C2, Ns2, Nt2, No_pad, float(scale))
    resp = pl.pallas_call(
        kernel,
        out_shape=jax.ShapeDtypeStruct((B, 1, No_pad), jnp.float32),
        grid_spec=pltpu.PrefetchScalarGridSpec(
            num_scalar_prefetch=0,
            grid=(B,),
            in_specs=[
                pl.BlockSpec((1, K1, N1), lambda b: (b, 0, 0)),   # per-batch patches
                rep2((C1, K1)),                                   # w1 (bf16)
                rep2((C1, 1)),                                    # b1 (f32)
                rep2((n_tap * C2, C1)),                           # w2 tap-stacked (bf16)
                rep2((C2, 1)),                                    # b2 (f32)
                rep3((n_tap, N1, N2)),                            # conv2 selection (bf16)
                rep2((Ns2, Nt2 * No_pad)),                        # corr selection (bf16)
            ],
            out_specs=pl.BlockSpec((1, 1, No_pad), lambda b: (b, 0, 0)),
        ),
        compiler_params=pltpu.CompilerParams(
            dimension_semantics=("parallel",)),
    )(cols, w1m, b1c, w2row, b2c, sel, scw)
    return resp[:, 0, :No].reshape(B, 1, Ho, Wo)


# -----------------------------------------------------------------------------
# Parameters + pure-JAX reference (lax conv) for a correctness check.
# -----------------------------------------------------------------------------
def init_params(key):
    k1, k2, k3, k4 = jax.random.split(key, 4)
    return {
        "w1": 0.1 * jax.random.normal(k1, (8, 4, 3, 3), jnp.float32),
        "b1": 0.1 * jax.random.normal(k2, (8,), jnp.float32),
        "w2": 0.1 * jax.random.normal(k3, (16, 8, 3, 3), jnp.float32),
        "b2": 0.1 * jax.random.normal(k4, (16,), jnp.float32),
    }


def _conv_ref(x, w, b):
    y = lax.conv_general_dilated(
        x, w, window_strides=(1, 1), padding="VALID",
        dimension_numbers=("NCHW", "OIHW", "NCHW"))
    return jnp.maximum(y + b[None, :, None, None], 0.0)


def _corr_ref(s, t, scale=1e-3):
    outs = []
    for i in range(s.shape[0]):
        o = lax.conv_general_dilated(
            s[i:i + 1], t[i:i + 1], window_strides=(1, 1), padding="VALID",
            dimension_numbers=("NCHW", "OIHW", "NCHW"))
        outs.append(o)
    return scale * jnp.concatenate(outs, axis=0)


def _siamfc_ref(params, search, template):
    def backbone(x):
        x = _conv_ref(x, params["w1"], params["b1"])
        x = _conv_ref(x, params["w2"], params["b2"])
        return x
    return _corr_ref(backbone(search), backbone(template))


if __name__ == "__main__":
    key = jax.random.PRNGKey(0)
    kp, ks, kt = jax.random.split(key, 3)

    params = init_params(kp)
    search = jax.random.normal(ks, (2, 4, 16, 16), jnp.float32)     # search patch
    template = jax.random.normal(kt, (2, 4, 8, 8), jnp.float32)     # template patch

    fwd = jax.jit(siamfc_forward)
    out = jax.block_until_ready(fwd(params, search, template))
    assert out.shape == (2, 1, 9, 9), out.shape

    ref = jax.block_until_ready(_siamfc_ref(params, search, template))
    # bf16 MXU operands with f32 accumulation; the final 1e-3 scale keeps outputs
    # small, so absolute tolerance comfortably covers bf16 rounding of activations.
    if not np.allclose(np.asarray(out), np.asarray(ref), rtol=1e-2, atol=2e-3):
        err = float(np.max(np.abs(np.asarray(out) - np.asarray(ref))))
        raise AssertionError(f"Pallas SiamFC output mismatch (max abs err {err})")

    print("KERNEL_OK")
</pallas_src>

<mosaic_0001>
module attributes {stable_mosaic.version = 11 : i64} {
  func.func @kernel(%arg0: i32, %arg1: memref<1x36x232xbf16, #tpu.memory_space<vmem>>, %arg2: memref<8x36xbf16, #tpu.memory_space<vmem>>, %arg3: memref<8x1xf32, #tpu.memory_space<vmem>>, %arg4: memref<144x8xbf16, #tpu.memory_space<vmem>>, %arg5: memref<16x1xf32, #tpu.memory_space<vmem>>, %arg6: memref<9x232x160xbf16, #tpu.memory_space<vmem>>, %arg7: memref<144x2048xbf16, #tpu.memory_space<vmem>>, %arg8: memref<1x1x128xf32, #tpu.memory_space<vmem>>) attributes {dimension_semantics = [#tpu.dimension_semantics<parallel>], iteration_bounds = array<i64: 2>, scalar_prefetch = 0 : i64, scratch_operands = 0 : i64, tpu.core_type = #tpu.core_type<tc>, window_params = [{transform_indices = @transform_0, window_bounds = array<i64: 1, 36, 232>}, {pipeline_mode = #tpu.pipeline_mode<synchronous>, transform_indices = @transform_1, window_bounds = array<i64: 8, 36>}, {pipeline_mode = #tpu.pipeline_mode<synchronous>, transform_indices = @transform_2, window_bounds = array<i64: 8, 1>}, {pipeline_mode = #tpu.pipeline_mode<synchronous>, transform_indices = @transform_3, window_bounds = array<i64: 144, 8>}, {pipeline_mode = #tpu.pipeline_mode<synchronous>, transform_indices = @transform_4, window_bounds = array<i64: 16, 1>}, {pipeline_mode = #tpu.pipeline_mode<synchronous>, transform_indices = @transform_5, window_bounds = array<i64: 9, 232, 160>}, {pipeline_mode = #tpu.pipeline_mode<synchronous>, transform_indices = @transform_6, window_bounds = array<i64: 144, 2048>}, {transform_indices = @transform_7, window_bounds = array<i64: 1, 1, 128>}]} {
    %c0 = arith.constant 0 : index
    %c0_0 = arith.constant 0 : index
    %0 = vector.load %arg2[%c0, %c0_0] : memref<8x36xbf16, #tpu.memory_space<vmem>>, vector<8x36xbf16>
    %c0_1 = arith.constant 0 : index
    %c0_2 = arith.constant 0 : index
    %c0_3 = arith.constant 0 : index
    %1 = vector.load %arg1[%c0_1, %c0_2, %c0_3] : memref<1x36x232xbf16, #tpu.memory_space<vmem>>, vector<1x36x232xbf16>
    %2 = vector.shape_cast %1 : vector<1x36x232xbf16> to vector<36x232xbf16>
    %cst = arith.constant dense<0.000000e+00> : vector<8x232xf32>
    %3 = tpu.matmul %0, %2, %cst {dimension_numbers = #tpu.dot_dimension_numbers<[1], [0], [0], [1], [0, 0, 1, 1], [], []>} : vector<8x36xbf16>, vector<36x232xbf16>, vector<8x232xf32> -> vector<8x232xf32>
    %c0_4 = arith.constant 0 : index
    %c0_5 = arith.constant 0 : index
    %4 = vector.load %arg3[%c0_4, %c0_5] : memref<8x1xf32, #tpu.memory_space<vmem>>, vector<8x1xf32>
    %5 = vector.broadcast %4 : vector<8x1xf32> to vector<8x232xf32>
    %6 = arith.addf %3, %5 : vector<8x232xf32>
    %cst_6 = arith.constant 0.000000e+00 : f32
    %7 = vector.broadcast %cst_6 : f32 to vector<8x232xf32>
    %8 = arith.maximumf %6, %7 : vector<8x232xf32>
    %9 = arith.truncf %8 : vector<8x232xf32> to vector<8x232xbf16>
    %c0_7 = arith.constant 0 : index
    %c0_8 = arith.constant 0 : index
    %10 = vector.load %arg4[%c0_7, %c0_8] : memref<144x8xbf16, #tpu.memory_space<vmem>>, vector<144x8xbf16>
    %cst_9 = arith.constant dense<0.000000e+00> : vector<144x232xf32>
    %11 = tpu.matmul %10, %9, %cst_9 {dimension_numbers = #tpu.dot_dimension_numbers<[1], [0], [0], [1], [0, 0, 1, 1], [], []>} : vector<144x8xbf16>, vector<8x232xbf16>, vector<144x232xf32> -> vector<144x232xf32>
    %12 = arith.truncf %11 : vector<144x232xf32> to vector<144x232xbf16>
    %cst_10 = arith.constant 0.000000e+00 : f32
    %13 = vector.broadcast %cst_10 : f32 to vector<16x160xf32>
    %14 = vector.extract_strided_slice %12 {offsets = [0, 0], sizes = [16, 232], strides = [1, 1]} : vector<144x232xbf16> to vector<16x232xbf16>
    %c0_11 = arith.constant 0 : index
    %c0_12 = arith.constant 0 : index
    %c0_13 = arith.constant 0 : index
    %15 = vector.load %arg6[%c0_11, %c0_12, %c0_13] : memref<9x232x160xbf16, #tpu.memory_space<vmem>>, vector<1x232x160xbf16>
    %16 = vector.shape_cast %15 : vector<1x232x160xbf16> to vector<232x160xbf16>
    %cst_14 = arith.constant dense<0.000000e+00> : vector<16x160xf32>
    %17 = tpu.matmul %14, %16, %cst_14 {dimension_numbers = #tpu.dot_dimension_numbers<[1], [0], [0], [1], [0, 0, 1, 1], [], []>} : vector<16x232xbf16>, vector<232x160xbf16>, vector<16x160xf32> -> vector<16x160xf32>
    %18 = arith.addf %13, %17 : vector<16x160xf32>
    %19 = vector.extract_strided_slice %12 {offsets = [16, 0], sizes = [16, 232], strides = [1, 1]} : vector<144x232xbf16> to vector<16x232xbf16>
    %c1 = arith.constant 1 : index
    %c0_15 = arith.constant 0 : index
    %c0_16 = arith.constant 0 : index
    %20 = vector.load %arg6[%c1, %c0_15, %c0_16] : memref<9x232x160xbf16, #tpu.memory_space<vmem>>, vector<1x232x160xbf16>
    %21 = vector.shape_cast %20 : vector<1x232x160xbf16> to vector<232x160xbf16>
    %cst_17 = arith.constant dense<0.000000e+00> : vector<16x160xf32>
    %22 = tpu.matmul %19, %21, %cst_17 {dimension_numbers = #tpu.dot_dimension_numbers<[1], [0], [0], [1], [0, 0, 1, 1], [], []>} : vector<16x232xbf16>, vector<232x160xbf16>, vector<16x160xf32> -> vector<16x160xf32>
    %23 = arith.addf %18, %22 : vector<16x160xf32>
    %24 = vector.extract_strided_slice %12 {offsets = [32, 0], sizes = [16, 232], strides = [1, 1]} : vector<144x232xbf16> to vector<16x232xbf16>
    %c2 = arith.constant 2 : index
    %c0_18 = arith.constant 0 : index
    %c0_19 = arith.constant 0 : index
    %25 = vector.load %arg6[%c2, %c0_18, %c0_19] : memref<9x232x160xbf16, #tpu.memory_space<vmem>>, vector<1x232x160xbf16>
    %26 = vector.shape_cast %25 : vector<1x232x160xbf16> to vector<232x160xbf16>
    %cst_20 = arith.constant dense<0.000000e+00> : vector<16x160xf32>
    %27 = tpu.matmul %24, %26, %cst_20 {dimension_numbers = #tpu.dot_dimension_numbers<[1], [0], [0], [1], [0, 0, 1, 1], [], []>} : vector<16x232xbf16>, vector<232x160xbf16>, vector<16x160xf32> -> vector<16x160xf32>
    %28 = arith.addf %23, %27 : vector<16x160xf32>
    %29 = vector.extract_strided_slice %12 {offsets = [48, 0], sizes = [16, 232], strides = [1, 1]} : vector<144x232xbf16> to vector<16x232xbf16>
    %c3 = arith.constant 3 : index
    %c0_21 = arith.constant 0 : index
    %c0_22 = arith.constant 0 : index
    %30 = vector.load %arg6[%c3, %c0_21, %c0_22] : memref<9x232x160xbf16, #tpu.memory_space<vmem>>, vector<1x232x160xbf16>
    %31 = vector.shape_cast %30 : vector<1x232x160xbf16> to vector<232x160xbf16>
    %cst_23 = arith.constant dense<0.000000e+00> : vector<16x160xf32>
    %32 = tpu.matmul %29, %31, %cst_23 {dimension_numbers = #tpu.dot_dimension_numbers<[1], [0], [0], [1], [0, 0, 1, 1], [], []>} : vector<16x232xbf16>, vector<232x160xbf16>, vector<16x160xf32> -> vector<16x160xf32>
    %33 = arith.addf %28, %32 : vector<16x160xf32>
    %34 = vector.extract_strided_slice %12 {offsets = [64, 0], sizes = [16, 232], strides = [1, 1]} : vector<144x232xbf16> to vector<16x232xbf16>
    %c4 = arith.constant 4 : index
    %c0_24 = arith.constant 0 : index
    %c0_25 = arith.constant 0 : index
    %35 = vector.load %arg6[%c4, %c0_24, %c0_25] : memref<9x232x160xbf16, #tpu.memory_space<vmem>>, vector<1x232x160xbf16>
    %36 = vector.shape_cast %35 : vector<1x232x160xbf16> to vector<232x160xbf16>
    %cst_26 = arith.constant dense<0.000000e+00> : vector<16x160xf32>
    %37 = tpu.matmul %34, %36, %cst_26 {dimension_numbers = #tpu.dot_dimension_numbers<[1], [0], [0], [1], [0, 0, 1, 1], [], []>} : vector<16x232xbf16>, vector<232x160xbf16>, vector<16x160xf32> -> vector<16x160xf32>
    %38 = arith.addf %33, %37 : vector<16x160xf32>
    %39 = vector.extract_strided_slice %12 {offsets = [80, 0], sizes = [16, 232], strides = [1, 1]} : vector<144x232xbf16> to vector<16x232xbf16>
    %c5 = arith.constant 5 : index
    %c0_27 = arith.constant 0 : index
    %c0_28 = arith.constant 0 : index
    %40 = vector.load %arg6[%c5, %c0_27, %c0_28] : memref<9x232x160xbf16, #tpu.memory_space<vmem>>, vector<1x232x160xbf16>
    %41 = vector.shape_cast %40 : vector<1x232x160xbf16> to vector<232x160xbf16>
    %cst_29 = arith.constant dense<0.000000e+00> : vector<16x160xf32>
    %42 = tpu.matmul %39, %41, %cst_29 {dimension_numbers = #tpu.dot_dimension_numbers<[1], [0], [0], [1], [0, 0, 1, 1], [], []>} : vector<16x232xbf16>, vector<232x160xbf16>, vector<16x160xf32> -> vector<16x160xf32>
    %43 = arith.addf %38, %42 : vector<16x160xf32>
    %44 = vector.extract_strided_slice %12 {offsets = [96, 0], sizes = [16, 232], strides = [1, 1]} : vector<144x232xbf16> to vector<16x232xbf16>
    %c6 = arith.constant 6 : index
    %c0_30 = arith.constant 0 : index
    %c0_31 = arith.constant 0 : index
    %45 = vector.load %arg6[%c6, %c0_30, %c0_31] : memref<9x232x160xbf16, #tpu.memory_space<vmem>>, vector<1x232x160xbf16>
    %46 = vector.shape_cast %45 : vector<1x232x160xbf16> to vector<232x160xbf16>
    %cst_32 = arith.constant dense<0.000000e+00> : vector<16x160xf32>
    %47 = tpu.matmul %44, %46, %cst_32 {dimension_numbers = #tpu.dot_dimension_numbers<[1], [0], [0], [1], [0, 0, 1, 1], [], []>} : vector<16x232xbf16>, vector<232x160xbf16>, vector<16x160xf32> -> vector<16x160xf32>
    %48 = arith.addf %43, %47 : vector<16x160xf32>
    %49 = vector.extract_strided_slice %12 {offsets = [112, 0], sizes = [16, 232], strides = [1, 1]} : vector<144x232xbf16> to vector<16x232xbf16>
    %c7 = arith.constant 7 : index
    %c0_33 = arith.constant 0 : index
    %c0_34 = arith.constant 0 : index
    %50 = vector.load %arg6[%c7, %c0_33, %c0_34] : memref<9x232x160xbf16, #tpu.memory_space<vmem>>, vector<1x232x160xbf16>
    %51 = vector.shape_cast %50 : vector<1x232x160xbf16> to vector<232x160xbf16>
    %cst_35 = arith.constant dense<0.000000e+00> : vector<16x160xf32>
    %52 = tpu.matmul %49, %51, %cst_35 {dimension_numbers = #tpu.dot_dimension_numbers<[1], [0], [0], [1], [0, 0, 1, 1], [], []>} : vector<16x232xbf16>, vector<232x160xbf16>, vector<16x160xf32> -> vector<16x160xf32>
    %53 = arith.addf %48, %52 : vector<16x160xf32>
    %54 = vector.extract_strided_slice %12 {offsets = [128, 0], sizes = [16, 232], strides = [1, 1]} : vector<144x232xbf16> to vector<16x232xbf16>
    %c8 = arith.constant 8 : index
    %c0_36 = arith.constant 0 : index
    %c0_37 = arith.constant 0 : index
    %55 = vector.load %arg6[%c8, %c0_36, %c0_37] : memref<9x232x160xbf16, #tpu.memory_space<vmem>>, vector<1x232x160xbf16>
    %56 = vector.shape_cast %55 : vector<1x232x160xbf16> to vector<232x160xbf16>
    %cst_38 = arith.constant dense<0.000000e+00> : vector<16x160xf32>
    %57 = tpu.matmul %54, %56, %cst_38 {dimension_numbers = #tpu.dot_dimension_numbers<[1], [0], [0], [1], [0, 0, 1, 1], [], []>} : vector<16x232xbf16>, vector<232x160xbf16>, vector<16x160xf32> -> vector<16x160xf32>
    %58 = arith.addf %53, %57 : vector<16x160xf32>
    %c0_39 = arith.constant 0 : index
    %c0_40 = arith.constant 0 : index
    %59 = vector.load %arg5[%c0_39, %c0_40] : memref<16x1xf32, #tpu.memory_space<vmem>>, vector<16x1xf32>
    %60 = vector.broadcast %59 : vector<16x1xf32> to vector<16x160xf32>
    %61 = arith.addf %58, %60 : vector<16x160xf32>
    %cst_41 = arith.constant 0.000000e+00 : f32
    %62 = vector.broadcast %cst_41 : f32 to vector<16x160xf32>
    %63 = arith.maximumf %61, %62 : vector<16x160xf32>
    %64 = arith.truncf %63 : vector<16x160xf32> to vector<16x160xbf16>
    %65 = vector.extract_strided_slice %64 {offsets = [0, 0], sizes = [16, 144], strides = [1, 1]} : vector<16x160xbf16> to vector<16x144xbf16>
    %66 = vector.extract_strided_slice %64 {offsets = [0, 144], sizes = [16, 16], strides = [1, 1]} : vector<16x160xbf16> to vector<16x16xbf16>
    %cst_42 = arith.constant dense<0.000000e+00> : vector<16x144xf32>
    %67 = tpu.matmul %66, %65, %cst_42 {dimension_numbers = #tpu.dot_dimension_numbers<[0], [0], [1], [1], [0, 1, 1, 1], [], []>} : vector<16x16xbf16>, vector<16x144xbf16>, vector<16x144xf32> -> vector<16x144xf32>
    %68 = arith.truncf %67 : vector<16x144xf32> to vector<16x144xbf16>
    %c0_43 = arith.constant 0 : index
    %c0_44 = arith.constant 0 : index
    %69 = vector.load %arg7[%c0_43, %c0_44] : memref<144x2048xbf16, #tpu.memory_space<vmem>>, vector<144x2048xbf16>
    %cst_45 = arith.constant dense<0.000000e+00> : vector<16x2048xf32>
    %70 = tpu.matmul %68, %69, %cst_45 {dimension_numbers = #tpu.dot_dimension_numbers<[1], [0], [0], [1], [0, 0, 1, 1], [], []>} : vector<16x144xbf16>, vector<144x2048xbf16>, vector<16x2048xf32> -> vector<16x2048xf32>
    %71 = tpu.iota {dimensions = array<i32: 0>} : vector<16x128xi32>
    %cst_46 = arith.constant 0.000000e+00 : f32
    %72 = vector.broadcast %cst_46 : f32 to vector<16x128xf32>
    %73 = vector.extract_strided_slice %70 {offsets = [0, 0], sizes = [16, 128], strides = [1, 1]} : vector<16x2048xf32> to vector<16x128xf32>
    %c0_i32 = arith.constant 0 : i32
    %74 = vector.broadcast %c0_i32 : i32 to vector<16x128xi32>
    %75 = arith.cmpi eq, %71, %74 : vector<16x128xi32>
    %cst_47 = arith.constant 0.000000e+00 : f32
    %76 = vector.broadcast %cst_47 : f32 to vector<16x128xf32>
    %77 = arith.select %75, %73, %76 : vector<16x128xi1>, vector<16x128xf32>
    %78 = arith.addf %72, %77 : vector<16x128xf32>
    %79 = vector.extract_strided_slice %70 {offsets = [0, 128], sizes = [16, 128], strides = [1, 1]} : vector<16x2048xf32> to vector<16x128xf32>
    %c1_i32 = arith.constant 1 : i32
    %80 = vector.broadcast %c1_i32 : i32 to vector<16x128xi32>
    %81 = arith.cmpi eq, %71, %80 : vector<16x128xi32>
    %cst_48 = arith.constant 0.000000e+00 : f32
    %82 = vector.broadcast %cst_48 : f32 to vector<16x128xf32>
    %83 = arith.select %81, %79, %82 : vector<16x128xi1>, vector<16x128xf32>
    %84 = arith.addf %78, %83 : vector<16x128xf32>
    %85 = vector.extract_strided_slice %70 {offsets = [0, 256], sizes = [16, 128], strides = [1, 1]} : vector<16x2048xf32> to vector<16x128xf32>
    %c2_i32 = arith.constant 2 : i32
    %86 = vector.broadcast %c2_i32 : i32 to vector<16x128xi32>
    %87 = arith.cmpi eq, %71, %86 : vector<16x128xi32>
    %cst_49 = arith.constant 0.000000e+00 : f32
    %88 = vector.broadcast %cst_49 : f32 to vector<16x128xf32>
    %89 = arith.select %87, %85, %88 : vector<16x128xi1>, vector<16x128xf32>
    %90 = arith.addf %84, %89 : vector<16x128xf32>
    %91 = vector.extract_strided_slice %70 {offsets = [0, 384], sizes = [16, 128], strides = [1, 1]} : vector<16x2048xf32> to vector<16x128xf32>
    %c3_i32 = arith.constant 3 : i32
    %92 = vector.broadcast %c3_i32 : i32 to vector<16x128xi32>
    %93 = arith.cmpi eq, %71, %92 : vector<16x128xi32>
    %cst_50 = arith.constant 0.000000e+00 : f32
    %94 = vector.broadcast %cst_50 : f32 to vector<16x128xf32>
    %95 = arith.select %93, %91, %94 : vector<16x128xi1>, vector<16x128xf32>
    %96 = arith.addf %90, %95 : vector<16x128xf32>
    %97 = vector.extract_strided_slice %70 {offsets = [0, 512], sizes = [16, 128], strides = [1, 1]} : vector<16x2048xf32> to vector<16x128xf32>
    %c4_i32 = arith.constant 4 : i32
    %98 = vector.broadcast %c4_i32 : i32 to vector<16x128xi32>
    %99 = arith.cmpi eq, %71, %98 : vector<16x128xi32>
    %cst_51 = arith.constant 0.000000e+00 : f32
    %100 = vector.broadcast %cst_51 : f32 to vector<16x128xf32>
    %101 = arith.select %99, %97, %100 : vector<16x128xi1>, vector<16x128xf32>
    %102 = arith.addf %96, %101 : vector<16x128xf32>
    %103 = vector.extract_strided_slice %70 {offsets = [0, 640], sizes = [16, 128], strides = [1, 1]} : vector<16x2048xf32> to vector<16x128xf32>
    %c5_i32 = arith.constant 5 : i32
    %104 = vector.broadcast %c5_i32 : i32 to vector<16x128xi32>
    %105 = arith.cmpi eq, %71, %104 : vector<16x128xi32>
    %cst_52 = arith.constant 0.000000e+00 : f32
    %106 = vector.broadcast %cst_52 : f32 to vector<16x128xf32>
    %107 = arith.select %105, %103, %106 : vector<16x128xi1>, vector<16x128xf32>
    %108 = arith.addf %102, %107 : vector<16x128xf32>
    %109 = vector.extract_strided_slice %70 {offsets = [0, 768], sizes = [16, 128], strides = [1, 1]} : vector<16x2048xf32> to vector<16x128xf32>
    %c6_i32 = arith.constant 6 : i32
    %110 = vector.broadcast %c6_i32 : i32 to vector<16x128xi32>
    %111 = arith.cmpi eq, %71, %110 : vector<16x128xi32>
    %cst_53 = arith.constant 0.000000e+00 : f32
    %112 = vector.broadcast %cst_53 : f32 to vector<16x128xf32>
    %113 = arith.select %111, %109, %112 : vector<16x128xi1>, vector<16x128xf32>
    %114 = arith.addf %108, %113 : vector<16x128xf32>
    %115 = vector.extract_strided_slice %70 {offsets = [0, 896], sizes = [16, 128], strides = [1, 1]} : vector<16x2048xf32> to vector<16x128xf32>
    %c7_i32 = arith.constant 7 : i32
    %116 = vector.broadcast %c7_i32 : i32 to vector<16x128xi32>
    %117 = arith.cmpi eq, %71, %116 : vector<16x128xi32>
    %cst_54 = arith.constant 0.000000e+00 : f32
    %118 = vector.broadcast %cst_54 : f32 to vector<16x128xf32>
    %119 = arith.select %117, %115, %118 : vector<16x128xi1>, vector<16x128xf32>
    %120 = arith.addf %114, %119 : vector<16x128xf32>
    %121 = vector.extract_strided_slice %70 {offsets = [0, 1024], sizes = [16, 128], strides = [1, 1]} : vector<16x2048xf32> to vector<16x128xf32>
    %c8_i32 = arith.constant 8 : i32
    %122 = vector.broadcast %c8_i32 : i32 to vector<16x128xi32>
    %123 = arith.cmpi eq, %71, %122 : vector<16x128xi32>
    %cst_55 = arith.constant 0.000000e+00 : f32
    %124 = vector.broadcast %cst_55 : f32 to vector<16x128xf32>
    %125 = arith.select %123, %121, %124 : vector<16x128xi1>, vector<16x128xf32>
    %126 = arith.addf %120, %125 : vector<16x128xf32>
    %127 = vector.extract_strided_slice %70 {offsets = [0, 1152], sizes = [16, 128], strides = [1, 1]} : vector<16x2048xf32> to vector<16x128xf32>
    %c9_i32 = arith.constant 9 : i32
    %128 = vector.broadcast %c9_i32 : i32 to vector<16x128xi32>
    %129 = arith.cmpi eq, %71, %128 : vector<16x128xi32>
    %cst_56 = arith.constant 0.000000e+00 : f32
    %130 = vector.broadcast %cst_56 : f32 to vector<16x128xf32>
    %131 = arith.select %129, %127, %130 : vector<16x128xi1>, vector<16x128xf32>
    %132 = arith.addf %126, %131 : vector<16x128xf32>
    %133 = vector.extract_strided_slice %70 {offsets = [0, 1280], sizes = [16, 128], strides = [1, 1]} : vector<16x2048xf32> to vector<16x128xf32>
    %c10_i32 = arith.constant 10 : i32
    %134 = vector.broadcast %c10_i32 : i32 to vector<16x128xi32>
    %135 = arith.cmpi eq, %71, %134 : vector<16x128xi32>
    %cst_57 = arith.constant 0.000000e+00 : f32
    %136 = vector.broadcast %cst_57 : f32 to vector<16x128xf32>
    %137 = arith.select %135, %133, %136 : vector<16x128xi1>, vector<16x128xf32>
    %138 = arith.addf %132, %137 : vector<16x128xf32>
    %139 = vector.extract_strided_slice %70 {offsets = [0, 1408], sizes = [16, 128], strides = [1, 1]} : vector<16x2048xf32> to vector<16x128xf32>
    %c11_i32 = arith.constant 11 : i32
    %140 = vector.broadcast %c11_i32 : i32 to vector<16x128xi32>
    %141 = arith.cmpi eq, %71, %140 : vector<16x128xi32>
    %cst_58 = arith.constant 0.000000e+00 : f32
    %142 = vector.broadcast %cst_58 : f32 to vector<16x128xf32>
    %143 = arith.select %141, %139, %142 : vector<16x128xi1>, vector<16x128xf32>
    %144 = arith.addf %138, %143 : vector<16x128xf32>
    %145 = vector.extract_strided_slice %70 {offsets = [0, 1536], sizes = [16, 128], strides = [1, 1]} : vector<16x2048xf32> to vector<16x128xf32>
    %c12_i32 = arith.constant 12 : i32
    %146 = vector.broadcast %c12_i32 : i32 to vector<16x128xi32>
    %147 = arith.cmpi eq, %71, %146 : vector<16x128xi32>
    %cst_59 = arith.constant 0.000000e+00 : f32
    %148 = vector.broadcast %cst_59 : f32 to vector<16x128xf32>
    %149 = arith.select %147, %145, %148 : vector<16x128xi1>, vector<16x128xf32>
    %150 = arith.addf %144, %149 : vector<16x128xf32>
    %151 = vector.extract_strided_slice %70 {offsets = [0, 1664], sizes = [16, 128], strides = [1, 1]} : vector<16x2048xf32> to vector<16x128xf32>
    %c13_i32 = arith.constant 13 : i32
    %152 = vector.broadcast %c13_i32 : i32 to vector<16x128xi32>
    %153 = arith.cmpi eq, %71, %152 : vector<16x128xi32>
    %cst_60 = arith.constant 0.000000e+00 : f32
    %154 = vector.broadcast %cst_60 : f32 to vector<16x128xf32>
    %155 = arith.select %153, %151, %154 : vector<16x128xi1>, vector<16x128xf32>
    %156 = arith.addf %150, %155 : vector<16x128xf32>
    %157 = vector.extract_strided_slice %70 {offsets = [0, 1792], sizes = [16, 128], strides = [1, 1]} : vector<16x2048xf32> to vector<16x128xf32>
    %c14_i32 = arith.constant 14 : i32
    %158 = vector.broadcast %c14_i32 : i32 to vector<16x128xi32>
    %159 = arith.cmpi eq, %71, %158 : vector<16x128xi32>
    %cst_61 = arith.constant 0.000000e+00 : f32
    %160 = vector.broadcast %cst_61 : f32 to vector<16x128xf32>
    %161 = arith.select %159, %157, %160 : vector<16x128xi1>, vector<16x128xf32>
    %162 = arith.addf %156, %161 : vector<16x128xf32>
    %163 = vector.extract_strided_slice %70 {offsets = [0, 1920], sizes = [16, 128], strides = [1, 1]} : vector<16x2048xf32> to vector<16x128xf32>
    %c15_i32 = arith.constant 15 : i32
    %164 = vector.broadcast %c15_i32 : i32 to vector<16x128xi32>
    %165 = arith.cmpi eq, %71, %164 : vector<16x128xi32>
    %cst_62 = arith.constant 0.000000e+00 : f32
    %166 = vector.broadcast %cst_62 : f32 to vector<16x128xf32>
    %167 = arith.select %165, %163, %166 : vector<16x128xi1>, vector<16x128xf32>
    %168 = arith.addf %162, %167 : vector<16x128xf32>
    %cst_63 = arith.constant dense<0.000000e+00> : vector<128xf32>
    %169 = vector.multi_reduction <add>, %168, %cst_63 [0] : vector<16x128xf32> to vector<128xf32>
    %170 = vector.shape_cast %169 : vector<128xf32> to vector<1x128xf32>
    %cst_64 = arith.constant 1.000000e-03 : f32
    %171 = vector.broadcast %cst_64 : f32 to vector<1x128xf32>
    %172 = arith.mulf %171, %170 : vector<1x128xf32>
    %c0_65 = arith.constant 0 : index
    %c0_66 = arith.constant 0 : index
    %c0_67 = arith.constant 0 : index
    %173 = vector.load %arg8[%c0_65, %c0_66, %c0_67] : memref<1x1x128xf32, #tpu.memory_space<vmem>>, vector<1x1x128xf32>
    %174 = vector.shape_cast %173 : vector<1x1x128xf32> to vector<1x128xf32>
    %175 = vector.shape_cast %172 : vector<1x128xf32> to vector<1x1x128xf32>
    tpu.vector_store %arg8[%c0_65, %c0_66, %c0_67], %175 {strides = array<i32>} : memref<1x1x128xf32, #tpu.memory_space<vmem>>, vector<1x1x128xf32>,
    return
  }
  func.func @transform_0(%arg0: i32) -> (i32, i32, i32) {
    %c0_i32 = arith.constant 0 : i32
    %c0_i32_0 = arith.constant 0 : i32
    %c0_i32_1 = arith.constant 0 : i32
    return %arg0, %c0_i32, %c0_i32_0 : i32, i32, i32
  }
  func.func @transform_1(%arg0: i32) -> (i32, i32) {
    %c0_i32 = arith.constant 0 : i32
    %c0_i32_0 = arith.constant 0 : i32
    %c0_i32_1 = arith.constant 0 : i32
    return %c0_i32, %c0_i32_0 : i32, i32
  }
  func.func @transform_2(%arg0: i32) -> (i32, i32) {
    %c0_i32 = arith.constant 0 : i32
    %c0_i32_0 = arith.constant 0 : i32
    %c0_i32_1 = arith.constant 0 : i32
    return %c0_i32, %c0_i32_0 : i32, i32
  }
  func.func @transform_3(%arg0: i32) -> (i32, i32) {
    %c0_i32 = arith.constant 0 : i32
    %c0_i32_0 = arith.constant 0 : i32
    %c0_i32_1 = arith.constant 0 : i32
    return %c0_i32, %c0_i32_0 : i32, i32
  }
  func.func @transform_4(%arg0: i32) -> (i32, i32) {
    %c0_i32 = arith.constant 0 : i32
    %c0_i32_0 = arith.constant 0 : i32
    %c0_i32_1 = arith.constant 0 : i32
    return %c0_i32, %c0_i32_0 : i32, i32
  }
  func.func @transform_5(%arg0: i32) -> (i32, i32, i32) {
    %c0_i32 = arith.constant 0 : i32
    %c0_i32_0 = arith.constant 0 : i32
    %c0_i32_1 = arith.constant 0 : i32
    %c0_i32_2 = arith.constant 0 : i32
    return %c0_i32, %c0_i32_0, %c0_i32_1 : i32, i32, i32
  }
  func.func @transform_6(%arg0: i32) -> (i32, i32) {
    %c0_i32 = arith.constant 0 : i32
    %c0_i32_0 = arith.constant 0 : i32
    %c0_i32_1 = arith.constant 0 : i32
    return %c0_i32, %c0_i32_0 : i32, i32
  }
  func.func @transform_7(%arg0: i32) -> (i32, i32, i32) {
    %c0_i32 = arith.constant 0 : i32
    %c0_i32_0 = arith.constant 0 : i32
    %c0_i32_1 = arith.constant 0 : i32
    return %arg0, %c0_i32, %c0_i32_0 : i32, i32, i32
  }
}

</mosaic_0001>

<bundles_post_ra>
// kernel: squeeze.0
= control target key start
LH: loop header
LB: loop body
LE: loop exit
PB: predicated region body
PF: predicated region fallthrough
CT: control target
= control target key end

     0   :  { %s271_s0 = inlined_call_operand.vmem [shape: f32[2,81], index: 0, kind: input, shape index: {}]   ;;  %s272_s1 = inlined_call_operand.hbm [shape: f32[2,1,9,9], index: 1, kind: output, shape index: {}]  }
   0x1   :  { %v5_v0 = vld [vmem:[%s271_s0] sm:$0x3] }
   0x2   :  { %6 = vst [vmem:[#allocation3] sm:$0x3] %v5_v0 }
   0x3   :  { %2 = vsyncpa [#allocation1], 0  ;;  %s23_s0 = smov 3  ;;  %s228_s8 = smov 101   ;;  %vm8_vm0 = vcmask 72704  }
   0x4   :  { %s229_s9 = smov 119   ;;  %s230_s10 = smov 92  }
   0x5   :  { %s231_s11 = smov 110   ;;  %s49_s12 = smov 3 }
   0x6   :  { %s232_s13 = smov 74   ;;  %s233_s14 = smov 83  }
   0x7   :  { %s234_s15 = smov 56   ;;  %s235_s16 = smov 65  }
   0x8   :  { %s236_s17 = smov [#allocation0]  }
   0x9   :  { %v24_v1 = vld [vmem:[#allocation3 + $0x1] ss:$-1 sm:%s23_s0]   ;;  %s173_s18 = sshll.u32 %s236_s17, 4  ;;  %s174_s18 = int_to_ptr.vmem [resolvable:$true] %s173_s18 }
   0xa   :  { %v10_v2 = vld [vmem:[#allocation3] sm:$0x3]   ;;  %25 = vrot.lane.b32.xlu1 %v24_v1, %s228_s8  ;;  %s204_s19 = scalar_lea.vmem %s174_s18, 288  ;;  %p209_p1 = scmp.lt.s32.totalorder %s174_s18, %s174_s18 }
   0xb   :  { %11 = vrot.lane.b32.xlu0 %v10_v2, %s229_s9  ;;  %v30_v3 = vld [vmem:[#allocation3] sm:$0x3]   ;;  %p205_p0 = scmp.ne.s32.totalorder %s174_s18, %s204_s19  ;;  %p210_p2 = scmp.lt.s32.totalorder %s204_s19, %s204_s19 }
   0xc   :  { %v16_v4 = vld [vmem:[#allocation3] sm:$0x3]  }
   0xd   :  { %v7_v5 = vld [vmem:[#allocation3] sm:$0x3]   ;;  %p211_p3 = por %p210_p2, %p209_p1 }
   0xe   :  { %9 = vst.msk [vmem:[#allocation2] ss:$72 sm:$0x3] %vm8_vm0, %v7_v5   ;;  %31 = vrot.lane.b32.xlu1 %v30_v3, %s230_s10  ;;  %v42_v6 = vld [vmem:[#allocation3] sm:$0x3]  }
   0xf   :  { %17 = vrot.lane.b32.xlu0 %v16_v4, %s231_s11  ;;  %v36_v7 = vld [vmem:[#allocation3] sm:$0x3]   ;;  %p212_p4 = pnand %p211_p3, %p205_p0 }
  0x10   :  { %v56_v8 = vld [vmem:[#allocation3] sm:$0x3]  }
  0x11   :  { %v50_v9 = vld [vmem:[#allocation3 + $0x1] ss:$-1 sm:%s49_s12]  }
  0x12   :  { %43 = vrot.lane.b32.xlu1 %v42_v6, %s232_s13 }
  0x13   :  { %37 = vrot.lane.b32.xlu0 %v36_v7, %s233_s14 }
  0x15   :  { %v65_v10 = vld [vmem:[#allocation2] sm:$0x1]  ;;  %v116_v11 = vld [vmem:[#allocation2 + $0x48] sm:$0x1] }
  0x16   :  { %67 = vst [vmem:[#allocation0] sm:$0x1] %v65_v10  ;;  %120 = vst [vmem:[#allocation0 + $0x9] sm:$0x1] %v116_v11  ;;  %57 = vrot.lane.b32.xlu1 %v56_v8, %s234_s15 }
  0x17   :  { %51 = vrot.lane.b32.xlu0 %v50_v9, %s235_s16 }
  0x7c   :  { %v26_v12 = vpop.permute.xlu1 %25  }
  0x7d   :  { %v12_v13 = vpop.permute.xlu0 %11   ;;  %29 = vst.msk [vmem:[#allocation2 + $0x60] ss:$-72 sm:$0x3] %vm8_vm0, %v26_v12  }
  0x7e   :  { %15 = vst.msk [vmem:[#allocation2 + $0x8] ss:$72 sm:$0x3] %vm8_vm0, %v12_v13  }
  0x80   :  { %v32_v14 = vpop.permute.xlu1 %31  }
  0x81   :  { %v18_v15 = vpop.permute.xlu0 %17   ;;  %35 = vst.msk [vmem:[#allocation2 + $0x20] ss:$72 sm:$0x3] %vm8_vm0, %v32_v14  }
  0x82   :  { %21 = vst.msk [vmem:[#allocation2 + $0x10] ss:$72 sm:$0x3] %vm8_vm0, %v18_v15  }
  0x84   :  { %v80_v16 = vld [vmem:[#allocation2 + $0x18] sm:$0x1]  ;;  %v134_v17 = vld [vmem:[#allocation2 + $0x60] sm:$0x1]  ;;  %v44_v19 = vpop.permute.xlu1 %43  }
  0x85   :  { %v69_v18 = vld [vmem:[#allocation2 + $0x8] sm:$0x1]  ;;  %v38_v20 = vpop.permute.xlu0 %37   ;;  %84 = vst [vmem:[#allocation0 + $0x3] sm:$0x1] %v80_v16  ;;  %138 = vst [vmem:[#allocation0 + $0xc] sm:$0x1] %v134_v17 }
  0x86   :  { %72 = vst [vmem:[#allocation0 + $0x1] sm:$0x1] %v69_v18  ;;  %v122_v21 = vld [vmem:[#allocation2 + $0x50] sm:$0x1] }
  0x87   :  { %47 = vst.msk [vmem:[#allocation2 + $0x30] ss:$72 sm:$0x3] %vm8_vm0, %v44_v19   ;;  %41 = vst.msk [vmem:[#allocation2 + $0x28] ss:$72 sm:$0x3] %vm8_vm0, %v38_v20  }
  0x88   :  { %126 = vst [vmem:[#allocation0 + $0xa] sm:$0x1] %v122_v21  ;;  %v86_v22 = vld [vmem:[#allocation2 + $0x20] sm:$0x1]  ;;  %v140_v23 = vld [vmem:[#allocation2 + $0x68] sm:$0x1]  ;;  %v58_v25 = vpop.permute.xlu1 %57  }
  0x89   :  { %v74_v24 = vld [vmem:[#allocation2 + $0x10] sm:$0x1]  ;;  %v52_v26 = vpop.permute.xlu0 %51   ;;  %90 = vst [vmem:[#allocation0 + $0x4] sm:$0x1] %v86_v22  ;;  %144 = vst [vmem:[#allocation0 + $0xd] sm:$0x1] %v140_v23 }
  0x8a   :  { %78 = vst [vmem:[#allocation0 + $0x2] sm:$0x1] %v74_v24  ;;  %v128_v27 = vld [vmem:[#allocation2 + $0x58] sm:$0x1] }
  0x8b   :  { %61 = vst.msk [vmem:[#allocation2 + $0x40] ss:$72 sm:$0x3] %vm8_vm0, %v58_v25   ;;  %55 = vst.msk [vmem:[#allocation2 + $0x80] ss:$-72 sm:$0x3] %vm8_vm0, %v52_v26  }
  0x8c   :  { %132 = vst [vmem:[#allocation0 + $0xb] sm:$0x1] %v128_v27 }
  0x8e   :  { %v98_v28 = vld [vmem:[#allocation2 + $0x30] sm:$0x1]  ;;  %v152_v29 = vld [vmem:[#allocation2 + $0x78] sm:$0x1]  ;;  %v92_v30 = vld [vmem:[#allocation2 + $0x28] sm:$0x1] }
  0x8f   :  { %102 = vst [vmem:[#allocation0 + $0x6] sm:$0x1] %v98_v28  ;;  %156 = vst [vmem:[#allocation0 + $0xf] sm:$0x1] %v152_v29  ;;  %v146_v31 = vld [vmem:[#allocation2 + $0x70] sm:$0x1] }
  0x90   :  { %96 = vst [vmem:[#allocation0 + $0x5] sm:$0x1] %v92_v30  ;;  %150 = vst [vmem:[#allocation0 + $0xe] sm:$0x1] %v146_v31 }
  0x92   :  { %v110_v32 = vld [vmem:[#allocation2 + $0x40] sm:$0x1]  ;;  %v164_v33 = vld [vmem:[#allocation2 + $0x88] sm:$0x1]  ;;  %v104_v34 = vld [vmem:[#allocation2 + $0x38] sm:$0x1] }
  0x93   :  { %114 = vst [vmem:[#allocation0 + $0x8] sm:$0x1] %v110_v32  ;;  %168 = vst [vmem:[#allocation0 + $0x11] sm:$0x1] %v164_v33  ;;  %v158_v35 = vld [vmem:[#allocation2 + $0x80] sm:$0x1] }
  0x94   :  { %108 = vst [vmem:[#allocation0 + $0x7] sm:$0x1] %v104_v34  ;;  %162 = vst [vmem:[#allocation0 + $0x10] sm:$0x1] %v158_v35 }
  0x95   :  { %215 = shalt.err (!%p212_p4)
}
  0x96   :  { %s216_s22 = scalar_lea.hbm %s272_s1, 288 }
  0x97   :  { %p217_p5 = scmp.ne.s32.totalorder %s272_s1, %s216_s22  ;;  %p220_p6 = scmp.lt.u32.totalorder %s216_s22, %s272_s1 }
  0x99   :  { %p222_p7 = pnand %p220_p6, %p217_p5 }
  0x9b   :  { %225 = shalt.err (!%p222_p7)
}
  0x9c   :  { %176 = dma.vmem_to_hbm [thread:$0]  %s174_s18, 288, %s272_s1, [#allocation1]  }
  0x9d   :  { %226 = dma.done.wait [#allocation1], 288  }
  0x9e   :  { %227 = vsyncadd [#allocation1], 4294967008 }
  0x9f   :  { %178 = vsyncpa [#allocation1], 1 }

// kernel: siamfc_forward.1
= control target key start
LH: loop header
LB: loop body
LE: loop exit
PB: predicated region body
PF: predicated region fallthrough
CT: control target
= control target key end

     0   :  { %s5352_s24 = smov 0   ;;  %s6838_s0 = inlined_call_operand.vmem [shape: bf16[2,36,232], index: 0, kind: input, shape index: {}]   ;;  %s6839_s1 = inlined_call_operand.vmem [shape: bf16[8,36], index: 1, kind: input, shape index: {}]   ;;  %s6840_s2 = inlined_call_operand.vmem [shape: f32[8,1], index: 2, kind: input, shape index: {}]   ;;  %s6841_s3 = inlined_call_operand.vmem [shape: bf16[144,8], index: 3, kind: input, shape index: {}]   ;;  %s6842_s4 = inlined_call_operand.vmem [shape: f32[16,1], index: 4, kind: input, shape index: {}]   ;;  %s6843_s5 = inlined_call_operand.vmem [shape: bf16[9,232,160], index: 5, kind: input, shape index: {}]   ;;  %s6844_s6 = inlined_call_operand.vmem [shape: bf16[144,2048], index: 6, kind: input, shape index: {}]   ;;  %s6845_s7 = inlined_call_operand.vmem [shape: f32[2,1,128], index: 7, kind: output, shape index: {}]  }
   0x1 LB: > { %s4136_s25 = sadd.s32 4294967295, %s5308_s24   ;;  %p4140_p0 = scmp.ge.s32.totalorder %s5308_s24, 1  ;;  %s5308_s24 = sphi %s5352_s24, %s17_s24  }
   0x2   : > { %p237_p1 = scmp.lt.s32.totalorder %s5308_s24, 3 }
   0x4   : > { %p238_p2 = pnand %p4140_p0, %p237_p1 }
   0x5   : > { %p267_p3 = scmp.lt.s32.totalorder (!%p238_p2), %s4136_s25, 1  ;;  %v5310_v0 = vmov (!%p238_p2), 0   ;;  %v282_v1 = vld [vmem:[%s6840_s2] sm:$0xff] (!%p238_p2)  ;;  %vm317_vm0 = vcmask (!%p238_p2), 1041408   ;;  %vm313_vm1 = vcmask (!%p238_p2), 293888   ;;  %vm460_vm2 = vcmask (!%p238_p2), 1043456  }
   0x6   : > { %241 = sbr.rel (%p238_p2) target bundleno = 1994 (0x7ca), region = 48  ;;  %356 = vmatprep.mubr.bf16.mxu0 (!%p238_p2), %v5310_v0  ;;  %4887 = vset.pattern.permute.xlu0 (!%p238_p2), %v5310_v0  ;;  %v2679_v2 = vld [vmem:[%s6842_s4] sm:$0xff] (!%p238_p2)  ;;  %v4911_v12 = vld [vmem:[%s6843_s5 + $0x1d0] ss:$8 sps:$4 sm:$0xff] (!%p238_p2)   ;;  %v4913_v13 = vld [vmem:[%s6843_s5 + $0x1d4] ss:$8 sps:$4 sm:$0xff] (!%p238_p2)  }
   0x7   : > { %285 = vperm.xlu0 (!%p238_p2), %4887, %v282_v1   ;;  %499 = vmatprep.mubr.bf16.mxu1 (!%p238_p2), %v5310_v0  ;;  %v276_v11 = vld [vmem:[%s6839_s1] sm:$0xf] (!%p238_p2)  ;;  %v4919_v14 = vld [vmem:[%s6843_s5 + $0x1e4] ss:$8 sps:$4 sm:$0xff] (!%p238_p2)   ;;  %v4925_v16 = vld [vmem:[%s6843_s5 + $0x1f4] ss:$8 sps:$4 sm:$0xff] (!%p238_p2)  }
   0x8   : > { %4888 = vset.pattern.permute.xlu1 (!%p238_p2), %v5310_v0  ;;  %v4917_v15 = vld [vmem:[%s6843_s5 + $0x1e0] ss:$8 sps:$4 sm:$0xff] (!%p238_p2)   ;;  %v4923_v17 = vld [vmem:[%s6843_s5 + $0x1f0] ss:$8 sps:$4 sm:$0xff] (!%p238_p2)   ;;  %v4931_v18 = vld [vmem:[%s6843_s5 + $0x204] ss:$8 sps:$4 sm:$0xff] (!%p238_p2)  }
   0x9   : > { %v4929_v19 = vld [vmem:[%s6843_s5 + $0x200] ss:$8 sps:$4 sm:$0xff] (!%p238_p2)   ;;  %v4937_v20 = vld [vmem:[%s6843_s5 + $0x214] ss:$8 sps:$4 sm:$0xff] (!%p238_p2)   ;;  %v4935_v21 = vld [vmem:[%s6843_s5 + $0x210] ss:$8 sps:$4 sm:$0xff] (!%p238_p2)  }
   0xa   : > { %v4944_v22 = vld [vmem:[%s6843_s5 + $0x224] ss:$8 sps:$4 sm:$0xff] (!%p238_p2)   ;;  %v4942_v23 = vld [vmem:[%s6843_s5 + $0x220] ss:$8 sps:$4 sm:$0xff] (!%p238_p2)   ;;  %v4950_v24 = vld [vmem:[%s6843_s5 + $0x234] ss:$8 sps:$4 sm:$0xff] (!%p238_p2)  }
   0xb   : > { %2683 = vperm.xlu0 (!%p238_p2), %4887, %v2679_v2   ;;  %v4948_v25 = vld [vmem:[%s6843_s5 + $0x230] ss:$8 sps:$4 sm:$0xff] (!%p238_p2)   ;;  %v4956_v26 = vld [vmem:[%s6843_s5 + $0x244] ss:$8 sps:$4 sm:$0xff] (!%p238_p2)   ;;  %v4954_v27 = vld [vmem:[%s6843_s5 + $0x240] ss:$8 sps:$4 sm:$0xff] (!%p238_p2)  }
   0xc   : > { %v4963_v28 = vld [vmem:[%s6843_s5 + $0x254] ss:$8 sps:$4 sm:$0xff] (!%p238_p2)   ;;  %v4961_v29 = vld [vmem:[%s6843_s5 + $0x250] ss:$8 sps:$4 sm:$0xff] (!%p238_p2)   ;;  %v4969_v30 = vld [vmem:[%s6843_s5 + $0x264] ss:$8 sps:$4 sm:$0xff] (!%p238_p2)  }
   0xd   : > { %s6847_s25 = smov (!%p267_p3, %s4136_s25), 1  ;;  %v4967_v31 = vld [vmem:[%s6843_s5 + $0x260] ss:$8 sps:$4 sm:$0xff]   ;;  %v4904_v43 = vld [vmem:[%s6843_s5 + $0xec] ss:$8 sps:$4 sm:$0xff]   ;;  %vm432_vm3 = vcmask 64512  }
   0xe   : > { %s4876_s30 = smul.u32 40, %s6847_s25  ;;  %v4897_v45 = vld [vmem:[%s6841_s3] sm:$0xff]   ;;  %v4902_v46 = vld [vmem:[%s6843_s5 + $0xe8] ss:$8 sps:$4 sm:$0xff]   ;;  %v4910_v49 = vld [vmem:[%s6843_s5 + $0x10c] ss:$8 sps:$4 sm:$0xff]   ;;  %s274_s29 = scalar_lea.vmem %s6845_s7, %s6847_s25 }
   0xf   : > { %v4907_v47 = vld [vmem:[%s6843_s5 + $0xfc] ss:$8 sps:$4 sm:$0xff]   ;;  %v4905_v48 = vld [vmem:[%s6843_s5 + $0xf8] ss:$8 sps:$4 sm:$0xff]   ;;  %v4898_v50 = vld [vmem:[%s6841_s3 + $0x8] sm:$0xff]   ;;  %vm812_vm4 = vcmask 850944  }
  0x10   : > { %s271_s10 = scalar_lea.vmem %s6838_s0, %s4876_s30  ;;  %v4908_v51 = vld [vmem:[%s6843_s5 + $0x108] ss:$8 sps:$4 sm:$0xff]   ;;  %v4916_v52 = vld [vmem:[%s6843_s5 + $0x11c] ss:$8 sps:$4 sm:$0xff]   ;;  %v4914_v53 = vld [vmem:[%s6843_s5 + $0x118] ss:$8 sps:$4 sm:$0xff]  }
  0x11   : > { %v4889_v3 = vld [vmem:[%s271_s10 + $0x4] ss:$8 sps:$4 sm:$0xff]   ;;  %v4891_v4 = vld [vmem:[%s271_s10] ss:$8 sps:$4 sm:$0xff]   ;;  %v4892_v5 = vld [vmem:[%s271_s10 + $0x14] ss:$8 sps:$4 sm:$0xff]  }
  0x12   : > { %324 = vmatprep.subr.bf16.mxu0 %v4889_v3  ;;  %v4894_v6 = vld [vmem:[%s271_s10 + $0x10] ss:$8 sps:$4 sm:$0xff]   ;;  %v281_v7 = vld [vmem:[%s271_s10 + $0x20] sm:$0x33]  ;;  %v4922_v54 = vld [vmem:[%s6843_s5 + $0x12c] ss:$8 sps:$4 sm:$0xff]  }
  0x13   : > { %325 = vmatpush1.bf16.msra.mxu0 %v4891_v4  ;;  %v4147_v8 = vcombine.high %v281_v7, %v281_v7  ;;  %v4146_v9 = vcombine.low %v281_v7, %v281_v7  ;;  %v4899_v55 = vld [vmem:[%s6841_s3 + $0x10] sm:$0xff]   ;;  %v4928_v57 = vld [vmem:[%s6843_s5 + $0x13c] ss:$8 sps:$4 sm:$0xff]   ;;  %v4926_v58 = vld [vmem:[%s6843_s5 + $0x138] ss:$8 sps:$4 sm:$0xff]   ;;  %s5311_s9 = smov 112  }
  0x14   : > { %326 = vmatprep.subr.bf16.mxu0 %v4892_v5  ;;  %v4920_v56 = vld [vmem:[%s6843_s5 + $0x128] ss:$8 sps:$4 sm:$0xff]   ;;  %v4934_v59 = vld [vmem:[%s6843_s5 + $0x14c] ss:$8 sps:$4 sm:$0xff]   ;;  %v4900_v60 = vld [vmem:[%s6841_s3 + $0x18] sm:$0xff]   ;;  %vm2721_vm5 = vcmask 130048  }
  0x15   : > { %v319_v10 = vsel %vm317_vm0, %v4146_v9, 0  ;;  %v4932_v61 = vld [vmem:[%s6843_s5 + $0x148] ss:$8 sps:$4 sm:$0xff]   ;;  %v4941_v62 = vld [vmem:[%s6843_s5 + $0x15c] ss:$8 sps:$4 sm:$0xff]  }
  0x16   : > { %v4939_v63 = vld [vmem:[%s6843_s5 + $0x158] ss:$8 sps:$4 sm:$0xff]   ;;  %v4947_v1 = vld [vmem:[%s6843_s5 + $0x16c] ss:$8 sps:$4 sm:$0xff]   ;;  %v4945_v3 = vld [vmem:[%s6843_s5 + $0x168] ss:$8 sps:$4 sm:$0xff]  }
  0x17   : > { %327 = vmatpush1.bf16.msra.mxu0 %v4894_v6  ;;  %v4901_v2 = vld [vmem:[%s6841_s3 + $0x20] sm:$0xff]   ;;  %v4960_v6 = vld [vmem:[%s6843_s5 + $0x18c] ss:$8 sps:$4 sm:$0xff]  }
  0x18   : > { %4148 = vmatprep.subr.msk.bf16.mxu0 %vm317_vm0, %v4147_v8  ;;  %v4953_v4 = vld [vmem:[%s6843_s5 + $0x17c] ss:$8 sps:$4 sm:$0xff]   ;;  %v4951_v5 = vld [vmem:[%s6843_s5 + $0x178] ss:$8 sps:$4 sm:$0xff]   ;;  %v4938_v7 = vld [vmem:[%s6841_s3 + $0x28] sm:$0xff]  }
  0x19   : > { %v4958_v8 = vld [vmem:[%s6843_s5 + $0x188] ss:$8 sps:$4 sm:$0xff]   ;;  %v4966_v9 = vld [vmem:[%s6843_s5 + $0x19c] ss:$8 sps:$4 sm:$0xff]  }
  0x1b   : > { %329 = vmatpush1.bf16.msra.mxu0 %v319_v10  ;;  %v4964_v10 = vld [vmem:[%s6843_s5 + $0x198] ss:$8 sps:$4 sm:$0xff]  }
  0x1c   : > { %1246 = vmatprep.subr.bf16.mxu0 %v4913_v13  ;;  %v4973_v13 = vld [vmem:[%s6843_s5 + $0x1ac] ss:$8 sps:$4 sm:$0xff]  }
  0x1e   : > { %4149 = vmatmul.mubr.msk.bf16.vlgmr.msra.gmra.mrb[0].mxu0 %vm313_vm1, %v276_v11  ;;  %v4957_v11 = vld [vmem:[%s6841_s3 + $0x30] sm:$0xff]  }
  0x1f   : > { %1247 = vmatpush1.bf16.msra.mxu0 %v4911_v12  ;;  %v4970_v12 = vld [vmem:[%s6841_s3 + $0x38] sm:$0xff]  }
  0x20   : > { %1248 = vmatprep.subr.bf16.mxu0 %v4919_v14  ;;  %v4976_v14 = vld [vmem:[%s6843_s5 + $0x274] ss:$8 sps:$4 sm:$0xff]  }
  0x23   : > { %1249 = vmatpush1.bf16.msra.mxu0 %v4917_v15  ;;  %v4971_v15 = vld [vmem:[%s6843_s5 + $0x1a8] ss:$8 sps:$4 sm:$0xff]  }
  0x24   : > { %1250 = vmatprep.subr.bf16.mxu0 %v4925_v16  ;;  %v4974_v16 = vld [vmem:[%s6843_s5 + $0x270] ss:$8 sps:$4 sm:$0xff]  }
  0x27   : > { %1251 = vmatpush1.bf16.msra.mxu0 %v4923_v17  ;;  %v4977_v17 = vld [vmem:[%s6843_s5 + $0x1b8] ss:$8 sps:$4 sm:$0xff]  }
  0x28   : > { %1252 = vmatprep.subr.bf16.mxu0 %v4931_v18  ;;  %v4979_v18 = vld [vmem:[%s6843_s5 + $0x1bc] ss:$8 sps:$4 sm:$0xff]  }
  0x2b   : > { %1253 = vmatpush1.bf16.msra.mxu0 %v4929_v19  ;;  %v4980_v19 = vld [vmem:[%s6843_s5 + $0x280] ss:$8 sps:$4 sm:$0xff]  }
  0x2c   : > { %1254 = vmatprep.subr.bf16.mxu0 %v4937_v20  ;;  %v4982_v20 = vld [vmem:[%s6843_s5 + $0x284] ss:$8 sps:$4 sm:$0xff]  }
  0x2f   : > { %1255 = vmatpush1.bf16.msra.mxu0 %v4935_v21  ;;  %v4983_v21 = vld [vmem:[%s6841_s3 + $0x40] sm:$0xff]  }
  0x30   : > { %1256 = vmatprep.subr.bf16.mxu0 %v4944_v22  ;;  %v4197_v22 = vld [vmem:[%s6843_s5 + $0x1c8] sm:$0xff] }
  0x33   : > { %1257 = vmatpush1.bf16.msra.mxu0 %v4942_v23  ;;  %v4227_v23 = vcombine.high %v4197_v22, %v4197_v22 }
  0x34   : > { %1258 = vmatprep.subr.bf16.mxu0 %v4950_v24  ;;  %v4987_v24 = vld [vmem:[%s6843_s5 + $0x294] ss:$8 sps:$4 sm:$0xff]  }
  0x37   : > { %1259 = vmatpush1.bf16.msra.mxu0 %v4948_v25  ;;  %v4226_v25 = vcombine.low %v4197_v22, %v4197_v22  ;;  %v5024_v22 = vld [vmem:[%s6843_s5 + $0x60] ss:$8 sps:$4 sm:$0xff]  }
  0x38   : > { %1260 = vmatprep.subr.bf16.mxu0 %v4956_v26  ;;  %v4985_v26 = vld [vmem:[%s6843_s5 + $0x290] ss:$8 sps:$4 sm:$0xff]  }
  0x3b   : > { %1261 = vmatpush1.bf16.msra.mxu0 %v4954_v27  ;;  %v817_v27 = vsel %vm460_vm2, %v4226_v25, 0  ;;  %v5032_v25 = vld [vmem:[%s6843_s5 + $0x74] ss:$8 sps:$4 sm:$0xff]  }
  0x3c   : > { %1262 = vmatprep.subr.bf16.mxu0 %v4963_v28  ;;  %v4991_v28 = vld [vmem:[%s6843_s5 + $0x4] ss:$8 sps:$4 sm:$0xff]  }
  0x3f   : > { %1263 = vmatpush1.bf16.msra.mxu0 %v4961_v29  ;;  %v4994_v29 = vld [vmem:[%s6843_s5 + $0x2a4] ss:$8 sps:$4 sm:$0xff]  }
  0x40   : > { %1264 = vmatprep.subr.bf16.mxu0 %v4969_v30  ;;  %v4992_v30 = vld [vmem:[%s6843_s5 + $0x2a0] ss:$8 sps:$4 sm:$0xff]  }
  0x43   : > { %1265 = vmatpush1.bf16.msra.mxu0 %v4967_v31  ;;  %v4290_v31 = vld [vmem:[%s6843_s5 + $0x2b0] sm:$0xff] }
  0x44   : > { %1266 = vmatprep.subr.bf16.mxu0 %v4976_v14  ;;  %v5021_v14 = vld [vmem:[%s6843_s5 + $0x2e8] ss:$8 sps:$4 sm:$0xff]  }
  0x47   : > { %1267 = vmatpush1.bf16.msra.mxu0 %v4974_v16  ;;  %v5026_v16 = vld [vmem:[%s6843_s5 + $0x64] ss:$8 sps:$4 sm:$0xff]  }
  0x48   : > { %1268 = vmatprep.subr.bf16.mxu0 %v4982_v20 }
  0x4b   : > { %1269 = vmatpush1.bf16.msra.mxu0 %v4980_v19 }
  0x4c   : > { %1270 = vmatprep.subr.bf16.mxu0 %v4987_v24 }
  0x4f   : > { %1271 = vmatpush1.bf16.msra.mxu0 %v4985_v26  ;;  %v5035_v26 = vld [vmem:[%s6843_s5 + $0x30c] ss:$8 sps:$4 sm:$0xff]  }
  0x50   : > { %1272 = vmatprep.subr.bf16.mxu0 %v4994_v29  ;;  %v5038_v29 = vld [vmem:[%s6843_s5 + $0x84] ss:$8 sps:$4 sm:$0xff]  }
  0x53   : > { %1273 = vmatpush1.bf16.msra.mxu0 %v4992_v30  ;;  %v5041_v30 = vld [vmem:[%s6843_s5 + $0x31c] ss:$8 sps:$4 sm:$0xff]  }
  0x86   : > { %v286_v32 = vpop.permute.xlu0 %285 }
  0xf1   : > { %v358_v33 = vpop.f32.mrb[0].mxu0 }
  0xf2   : > { %v359_v34 = vadd.f32 %v358_v33, %v286_v32  ;;  %v360_v35 = vpop.f32.mrb[1].mxu0  ;;  %v4319_v33 = vcombine.low %v4290_v31, %v4290_v31 }
  0xf3   : > { %v361_v36 = vadd.f32 %v360_v35, %v286_v32  ;;  %v362_v37 = vpop.f32.mrb[2].mxu0  ;;  %v4320_v32 = vcombine.high %v4290_v31, %v4290_v31  ;;  %v5005_v35 = vld [vmem:[%s6843_s5 + $0x2bc] ss:$8 sps:$4 sm:$0xff]   ;;  %v5036_v31 = vld [vmem:[%s6843_s5 + $0x80] ss:$8 sps:$4 sm:$0xff]  }
  0xf4   : > { %v365_v38 = vmax.f32 %v359_v34, 0.0  ;;  %v363_v39 = vpop.f32.mrb[3].mxu0  ;;  %v1241_v34 = vsel %vm460_vm2, %v4319_v33, 0  ;;  %v5044_v33 = vld [vmem:[%s6843_s5 + $0x94] ss:$8 sps:$4 sm:$0xff]  }
  0xf5   : > { %v366_v40 = vmax.f32 %v361_v36, 0.0  ;;  %4321 = vmatprep.subr.msk.bf16.mxu0 %vm460_vm2, %v4320_v32  ;;  %v5039_v32 = vld [vmem:[%s6843_s5 + $0x318] ss:$8 sps:$4 sm:$0xff]  }
  0xf6   : > { %v367_v41 = vpack.c.bf16 %v365_v38, %v365_v38  ;;  %1275 = vmatpush1.bf16.msra.mxu0 %v1241_v34  ;;  %v5047_v34 = vld [vmem:[%s6843_s5 + $0x32c] ss:$8 sps:$4 sm:$0xff]  }
  0xf7   : > { %v368_v42 = vpack.c.bf16 %v366_v40, %v366_v40  ;;  %1477 = vmatprep.subr.bf16.mxu0 %v5005_v35  ;;  %v5042_v35 = vld [vmem:[%s6843_s5 + $0x90] ss:$8 sps:$4 sm:$0xff]  }
  0xf8   : > { %v462_v44 = vsel %vm460_vm2, %v367_v41, 0 }
  0xf9   : > { %4159 = vmatprep.subr.msk.bf16.mxu1 %vm460_vm2, %v368_v42 }
  0xfa   : > { %468 = vmatpush1.bf16.msra.mxu1 %v462_v44 }
  0xfb   : > { %822 = vmatprep.subr.bf16.mxu1 %v4904_v43 }
  0xfd   : > { %4160 = vmatmul.mubr.msk.bf16.vlgmr.msra.gmra.mrb[0].mxu1 %vm432_vm3, %v4897_v45 }
  0xfe   : > { %509 = vmatprep.mubr.bf16.mxu1 %v5310_v0  ;;  %823 = vmatpush1.bf16.msra.mxu1 %v4902_v46 }
  0xff   : > { %824 = vmatprep.subr.bf16.mxu1 %v4907_v47 }
 0x102   : > { %825 = vmatpush1.bf16.msra.mxu1 %v4905_v48  ;;  %v4989_v48 = vld [vmem:[%s6843_s5] ss:$8 sps:$4 sm:$0xff]  }
 0x103   : > { %826 = vmatprep.subr.bf16.mxu1 %v4910_v49  ;;  %v4997_v49 = vld [vmem:[%s6843_s5 + $0x14] ss:$8 sps:$4 sm:$0xff]  }
 0x105   : > { %4161 = vmatmul.mubr.msk.bf16.gmra.mrb[4].mxu1 %vm432_vm3, %v4898_v50 }
 0x106   : > { %519 = vmatprep.mubr.bf16.mxu1 %v5310_v0  ;;  %827 = vmatpush1.bf16.msra.mxu1 %v4908_v51  ;;  %v4995_v51 = vld [vmem:[%s6843_s5 + $0x10] ss:$8 sps:$4 sm:$0xff]  }
 0x107   : > { %828 = vmatprep.subr.bf16.mxu1 %v4916_v52 }
 0x10a   : > { %829 = vmatpush1.bf16.msra.mxu1 %v4914_v53  ;;  %v5002_v53 = vld [vmem:[%s6843_s5 + $0x24] ss:$8 sps:$4 sm:$0xff]  }
 0x10b   : > { %830 = vmatprep.subr.bf16.mxu1 %v4922_v54 }
 0x10d   : > { %4162 = vmatmul.mubr.msk.bf16.gmra.mrb[8].mxu1 %vm432_vm3, %v4899_v55 }
 0x10e   : > { %529 = vmatprep.mubr.bf16.mxu1 %v5310_v0  ;;  %831 = vmatpush1.bf16.msra.mxu1 %v4920_v56 }
 0x10f   : > { %832 = vmatprep.subr.bf16.mxu1 %v4928_v57 }
 0x112   : > { %833 = vmatpush1.bf16.msra.mxu1 %v4926_v58  ;;  %v5000_v58 = vld [vmem:[%s6843_s5 + $0x20] ss:$8 sps:$4 sm:$0xff]  }
 0x113   : > { %834 = vmatprep.subr.bf16.mxu1 %v4934_v59  ;;  %v5003_v59 = vld [vmem:[%s6843_s5 + $0x2b8] ss:$8 sps:$4 sm:$0xff]  }
 0x115   : > { %4163 = vmatmul.mubr.msk.bf16.gmra.mrb[12].mxu1 %vm432_vm3, %v4900_v60  ;;  %v5008_v60 = vld [vmem:[%s6843_s5 + $0x34] ss:$8 sps:$4 sm:$0xff]  }
 0x116   : > { %539 = vmatprep.mubr.bf16.mxu1 %v5310_v0  ;;  %835 = vmatpush1.bf16.msra.mxu1 %v4932_v61  ;;  %v5011_v61 = vld [vmem:[%s6843_s5 + $0x2cc] ss:$8 sps:$4 sm:$0xff]  }
 0x117   : > { %836 = vmatprep.subr.bf16.mxu1 %v4941_v62  ;;  %v5006_v62 = vld [vmem:[%s6843_s5 + $0x30] ss:$8 sps:$4 sm:$0xff]  }
 0x11a   : > { %837 = vmatpush1.bf16.msra.mxu1 %v4939_v63  ;;  %v5009_v63 = vld [vmem:[%s6843_s5 + $0x2c8] ss:$8 sps:$4 sm:$0xff]  }
 0x11b   : > { %838 = vmatprep.subr.bf16.mxu1 %v4947_v1 }
 0x11d   : > { %4164 = vmatmul.mubr.msk.bf16.gmra.mrb[16].mxu1 %vm432_vm3, %v4901_v2  ;;  %v5014_v2 = vld [vmem:[%s6843_s5 + $0x44] ss:$8 sps:$4 sm:$0xff]  }
 0x11e   : > { %549 = vmatprep.mubr.bf16.mxu1 %v5310_v0  ;;  %839 = vmatpush1.bf16.msra.mxu1 %v4945_v3  ;;  %v5017_v3 = vld [vmem:[%s6843_s5 + $0x2dc] ss:$8 sps:$4 sm:$0xff]  }
 0x11f   : > { %840 = vmatprep.subr.bf16.mxu1 %v4953_v4 }
 0x122   : > { %841 = vmatpush1.bf16.msra.mxu1 %v4951_v5 }
 0x123   : > { %842 = vmatprep.subr.bf16.mxu1 %v4960_v6 }
 0x125   : > { %4165 = vmatmul.mubr.msk.bf16.gmra.mrb[20].mxu1 %vm432_vm3, %v4938_v7 }
 0x126   : > { %559 = vmatprep.mubr.bf16.mxu1 %v5310_v0  ;;  %843 = vmatpush1.bf16.msra.mxu1 %v4958_v8  ;;  %v5012_v8 = vld [vmem:[%s6843_s5 + $0x40] ss:$8 sps:$4 sm:$0xff]  }
 0x127   : > { %844 = vmatprep.subr.bf16.mxu1 %v4966_v9  ;;  %v5015_v9 = vld [vmem:[%s6843_s5 + $0x2d8] ss:$8 sps:$4 sm:$0xff]  }
 0x12a   : > { %845 = vmatpush1.bf16.msra.mxu1 %v4964_v10 }
 0x12b   : > { %846 = vmatprep.subr.bf16.mxu1 %v4973_v13  ;;  %v5018_v13 = vld [vmem:[%s6843_s5 + $0x50] ss:$8 sps:$4 sm:$0xff]  }
 0x12d   : > { %4166 = vmatmul.mubr.msk.bf16.gmra.mrb[24].mxu1 %vm432_vm3, %v4957_v11  ;;  %v5020_v11 = vld [vmem:[%s6843_s5 + $0x54] ss:$8 sps:$4 sm:$0xff]  }
 0x12e   : > { %569 = vmatprep.mubr.bf16.mxu1 %v5310_v0  ;;  %847 = vmatpush1.bf16.msra.mxu1 %v4971_v15 }
 0x12f   : > { %848 = vmatprep.subr.bf16.mxu1 %v4979_v18 }
 0x132   : > { %849 = vmatpush1.bf16.msra.mxu1 %v4977_v17  ;;  %v5029_v17 = vld [vmem:[%s6843_s5 + $0x2fc] ss:$8 sps:$4 sm:$0xff]  }
 0x133   : > { %4228 = vmatprep.subr.msk.bf16.mxu1 %vm460_vm2, %v4227_v23  ;;  %v5027_v23 = vld [vmem:[%s6843_s5 + $0x2f8] ss:$8 sps:$4 sm:$0xff]  }
 0x135   : > { %4167 = vmatmul.mubr.msk.bf16.gmra.mrb[28].mxu1 %vm432_vm3, %v4970_v12  ;;  %v5023_v12 = vld [vmem:[%s6843_s5 + $0x2ec] ss:$8 sps:$4 sm:$0xff]  }
 0x136   : > { %579 = vmatprep.mubr.bf16.mxu1 %v5310_v0  ;;  %851 = vmatpush1.bf16.msra.mxu1 %v817_v27  ;;  %v5030_v27 = vld [vmem:[%s6843_s5 + $0x70] ss:$8 sps:$4 sm:$0xff]  }
 0x137   : > { %1019 = vmatprep.subr.bf16.mxu1 %v4991_v28  ;;  %v5033_v28 = vld [vmem:[%s6843_s5 + $0x308] ss:$8 sps:$4 sm:$0xff]  }
 0x13d   : > { %4168 = vmatmul.mubr.msk.bf16.gmra.mrb[32].mxu1 %vm432_vm3, %v4983_v21 }
 0x1d0   : > { %v5609_v36 = vpop.f32.mrb[0].mxu1 }
 0x1d1   : > { %v503_v37 = vpop.f32.mrb[1].mxu1 }
 0x1d2   : > { %v5611_v38 = vpop.f32.mrb[2].mxu1 }
 0x1d3   : > { %v590_v39 = vpack.c.bf16 %v5611_v38, %v5609_v36  ;;  %v507_v40 = vpop.f32.mrb[3].mxu1  ;;  %v5087_v36 = vld [vmem:[%s6843_s5 + $0x3b4] ss:$8 sps:$4 sm:$0xff]   ;;  %v5090_v38 = vld [vmem:[%s6843_s5 + $0x3c4] ss:$8 sps:$4 sm:$0xff]  }
 0x1d4   : > { %v591_v41 = vpack.c.bf16 %v507_v40, %v503_v37  ;;  %v5045_v37 = vld [vmem:[%s6843_s5 + $0x328] ss:$8 sps:$4 sm:$0xff]   ;;  %v5050_v40 = vld [vmem:[%s6843_s5 + $0xa4] ss:$8 sps:$4 sm:$0xff]  }
 0x1d8   : > { %v511_v42 = vpop.f32.mrb[4].mxu1 }
 0x1d9   : > { %v513_v43 = vpop.f32.mrb[5].mxu1 }
 0x1da   : > { %v515_v44 = vpop.f32.mrb[6].mxu1 }
 0x1db   : > { %v592_v45 = vpack.c.bf16 %v515_v44, %v511_v42  ;;  %v517_v46 = vpop.f32.mrb[7].mxu1  ;;  %v5048_v42 = vld [vmem:[%s6843_s5 + $0xa0] ss:$8 sps:$4 sm:$0xff]   ;;  %v5056_v44 = vld [vmem:[%s6843_s5 + $0xb4] ss:$8 sps:$4 sm:$0xff]  }
 0x1dc   : > { %v593_v47 = vpack.c.bf16 %v517_v46, %v513_v43  ;;  %v5051_v43 = vld [vmem:[%s6843_s5 + $0x338] ss:$8 sps:$4 sm:$0xff]  }
 0x1dd   : > { %v5054_v46 = vld [vmem:[%s6843_s5 + $0xb0] ss:$8 sps:$4 sm:$0xff]  }
 0x1de   : > { %4229 = vmatprep.mubr.msk.bf16.mxu1 %vm812_vm4, %v593_v47  ;;  %v5057_v47 = vld [vmem:[%s6843_s5 + $0x348] ss:$8 sps:$4 sm:$0xff]  }
 0x1df   : > { %855 = vmatmul.mubr.bf16.vlgmr.msra.gmra.mrb[36].mxu1 %v592_v45  ;;  %v5059_v45 = vld [vmem:[%s6843_s5 + $0x34c] ss:$8 sps:$4 sm:$0xff]  }
 0x1e0   : > { %1020 = vmatpush1.bf16.msra.mxu1 %v4989_v48  ;;  %v521_v50 = vpop.f32.mrb[8].mxu1  ;;  %4261 = vmatprep.mubr.msk.bf16.mxu1 %vm812_vm4, %v591_v41  ;;  %v5053_v41 = vld [vmem:[%s6843_s5 + $0x33c] ss:$8 sps:$4 sm:$0xff]  }
 0x1e1   : > { %v523_v52 = vpop.f32.mrb[9].mxu1  ;;  %1021 = vmatprep.subr.bf16.mxu1 %v4997_v49  ;;  %v5062_v48 = vld [vmem:[%s6843_s5 + $0xc4] ss:$8 sps:$4 sm:$0xff]  }
 0x1e2   : > { %v525_v54 = vpop.f32.mrb[10].mxu1  ;;  %v5065_v49 = vld [vmem:[%s6843_s5 + $0x35c] ss:$8 sps:$4 sm:$0xff]  }
 0x1e3   : > { %v594_v55 = vpack.c.bf16 %v525_v54, %v521_v50  ;;  %v527_v56 = vpop.f32.mrb[11].mxu1  ;;  %v5060_v50 = vld [vmem:[%s6843_s5 + $0xc0] ss:$8 sps:$4 sm:$0xff]  }
 0x1e4   : > { %v595_v57 = vpack.c.bf16 %v527_v56, %v523_v52  ;;  %1022 = vmatpush1.bf16.msra.mxu1 %v4995_v51  ;;  %v5063_v51 = vld [vmem:[%s6843_s5 + $0x358] ss:$8 sps:$4 sm:$0xff]   ;;  %v5068_v52 = vld [vmem:[%s6843_s5 + $0xd4] ss:$8 sps:$4 sm:$0xff]   ;;  %v5069_v56 = vld [vmem:[%s6843_s5 + $0x368] ss:$8 sps:$4 sm:$0xff]  }
 0x1e5   : > { %1023 = vmatprep.subr.bf16.mxu1 %v5002_v53  ;;  %v5071_v53 = vld [vmem:[%s6843_s5 + $0x36c] ss:$8 sps:$4 sm:$0xff]   ;;  %v636_v54 = vld [vmem:[%s6843_s5 + $0xe0] sm:$0xff] }
 0x1e6   : > { %4322 = vmatprep.mubr.msk.bf16.mxu0 %vm812_vm4, %v595_v57 }
 0x1e7   : > { %1279 = vmatmul.mubr.bf16.vlgmr.msra.gmra.mrb[4].mxu0 %v594_v55  ;;  %v5066_v55 = vld [vmem:[%s6843_s5 + $0xd0] ss:$8 sps:$4 sm:$0xff]  }
 0x1e8   : > { %1024 = vmatpush1.bf16.msra.mxu1 %v5000_v58  ;;  %1478 = vmatpush1.bf16.msra.mxu0 %v5003_v59  ;;  %v5648_v1 = vpop.f32.mrb[12].mxu1  ;;  %v4259_v58 = vcombine.high %v636_v54, %v636_v54  ;;  %v5075_v59 = vld [vmem:[%s6843_s5 + $0x37c] ss:$8 sps:$4 sm:$0xff]  }
 0x1e9   : > { %1025 = vmatprep.subr.bf16.mxu1 %v5008_v60  ;;  %1479 = vmatprep.subr.bf16.mxu0 %v5011_v61  ;;  %v533_v4 = vpop.f32.mrb[13].mxu1  ;;  %v4258_v60 = vcombine.low %v636_v54, %v636_v54  ;;  %v5129_v54 = vld [vmem:[%s6843_s5 + $0x498] ss:$8 sps:$4 sm:$0xff]  }
 0x1ea   : > { %v5656_v5 = vpop.f32.mrb[14].mxu1 }
 0x1eb   : > { %v596_v6 = vpack.c.bf16 %v5656_v5, %v5648_v1  ;;  %v537_v7 = vpop.f32.mrb[15].mxu1  ;;  %v5093_v1 = vld [vmem:[%s6843_s5 + $0x3d4] ss:$8 sps:$4 sm:$0xff]   ;;  %v5091_v5 = vld [vmem:[%s6843_s5 + $0x3d0] ss:$8 sps:$4 sm:$0xff]  }
 0x1ec   : > { %1026 = vmatpush1.bf16.msra.mxu1 %v5006_v62  ;;  %1480 = vmatpush1.bf16.msra.mxu0 %v5009_v63  ;;  %v597_v10 = vpack.c.bf16 %v537_v7, %v533_v4  ;;  %v1014_v4 = vsel %vm460_vm2, %v4258_v60, 0  ;;  %v5079_v7 = vld [vmem:[%s6843_s5 + $0x38c] ss:$8 sps:$4 sm:$0xff]   ;;  %v5135_v60 = vld [vmem:[%s6843_s5 + $0x4b8] ss:$8 sps:$4 sm:$0xff]  }
 0x1ed   : > { %1027 = vmatprep.subr.bf16.mxu1 %v5014_v2  ;;  %1481 = vmatprep.subr.bf16.mxu0 %v5017_v3  ;;  %v5073_v2 = vld [vmem:[%s6843_s5 + $0x378] ss:$8 sps:$4 sm:$0xff]  }
 0x1ee   : > { %4383 = vmatprep.mubr.msk.bf16.mxu0 %vm812_vm4, %v597_v10  ;;  %v5077_v10 = vld [vmem:[%s6843_s5 + $0x388] ss:$8 sps:$4 sm:$0xff]  }
 0x1f0   : > { %1028 = vmatpush1.bf16.msra.mxu1 %v5012_v8  ;;  %1482 = vmatpush1.bf16.msra.mxu0 %v5015_v9  ;;  %v5679_v15 = vpop.f32.mrb[16].mxu1  ;;  %v4351_v9 = vld [vmem:[%s6843_s5 + $0x398] sm:$0xff] }
 0x1f1   : > { %1029 = vmatprep.subr.bf16.mxu1 %v5020_v11  ;;  %1483 = vmatprep.subr.bf16.mxu0 %v5023_v12  ;;  %v5687_v18 = vpop.f32.mrb[17].mxu1  ;;  %v4381_v11 = vcombine.high %v4351_v9, %v4351_v9  ;;  %v4380_v12 = vcombine.low %v4351_v9, %v4351_v9  ;;  %v5138_v9 = vld [vmem:[%s6843_s5 + $0x4c8] ss:$8 sps:$4 sm:$0xff]  }
 0x1f2   : > { %v5689_v19 = vpop.f32.mrb[18].mxu1 }
 0x1f3   : > { %v598_v20 = vpack.c.bf16 %v5689_v19, %v5679_v15  ;;  %v5693_v21 = vpop.f32.mrb[19].mxu1  ;;  %v5132_v15 = vld [vmem:[%s6843_s5 + $0x4a8] ss:$8 sps:$4 sm:$0xff]  }
 0x1f4   : > { %1030 = vmatpush1.bf16.msra.mxu1 %v5018_v13  ;;  %1484 = vmatpush1.bf16.msra.mxu0 %v5021_v14  ;;  %v599_v24 = vpack.c.bf16 %v5693_v21, %v5687_v18  ;;  %v1472_v13 = vsel %vm460_vm2, %v4380_v12, 0  ;;  %v5084_v14 = vld [vmem:[%s6843_s5 + $0x3a4] ss:$8 sps:$4 sm:$0xff]   ;;  %v5099_v18 = vld [vmem:[%s6843_s5 + $0x3f4] ss:$8 sps:$4 sm:$0xff]  }
 0x1f5   : > { %1031 = vmatprep.subr.bf16.mxu1 %v5026_v16  ;;  %1485 = vmatprep.subr.bf16.mxu0 %v5029_v17  ;;  %v5082_v16 = vld [vmem:[%s6843_s5 + $0x3a0] ss:$8 sps:$4 sm:$0xff]   ;;  %v5097_v21 = vld [vmem:[%s6843_s5 + $0x3f0] ss:$8 sps:$4 sm:$0xff]   ;;  %v5143_v12 = vld [vmem:[%s6843_s5 + $0x4dc] ss:$8 sps:$4 sm:$0xff]  }
 0x1f6   : > { %v5094_v17 = vld [vmem:[%s6843_s5 + $0x3e0] ss:$8 sps:$4 sm:$0xff]  }
 0x1f8   : > { %1032 = vmatpush1.bf16.msra.mxu1 %v5024_v22  ;;  %1486 = vmatpush1.bf16.msra.mxu0 %v5027_v23  ;;  %v5790_v57 = vpop.f32.mrb[20].mxu1  ;;  %v5102_v22 = vld [vmem:[%s6843_s5 + $0x404] ss:$8 sps:$4 sm:$0xff]   ;;  %v5100_v23 = vld [vmem:[%s6843_s5 + $0x400] ss:$8 sps:$4 sm:$0xff]  }
 0x1f9   : > { %1033 = vmatprep.subr.bf16.mxu1 %v5032_v25  ;;  %1487 = vmatprep.subr.bf16.mxu0 %v5035_v26  ;;  %v5795_v61 = vpop.f32.mrb[21].mxu1  ;;  %v5103_v25 = vld [vmem:[%s6843_s5 + $0x410] ss:$8 sps:$4 sm:$0xff]   ;;  %v5108_v26 = vld [vmem:[%s6843_s5 + $0x424] ss:$8 sps:$4 sm:$0xff]  }
 0x1fa   : > { %v5797_v62 = vpop.f32.mrb[22].mxu1 }
 0x1fb   : > { %v600_v63 = vpack.c.bf16 %v5797_v62, %v5790_v57  ;;  %v5804_v3 = vpop.f32.mrb[23].mxu1  ;;  %v5176_v57 = vld [vmem:[%s6843_s5 + $0x590] ss:$8 sps:$4 sm:$0xff]   ;;  %v5181_v62 = vld [vmem:[%s6843_s5 + $0x5a4] ss:$8 sps:$4 sm:$0xff]  }
 0x1fc   : > { %1034 = vmatpush1.bf16.msra.mxu1 %v5030_v27  ;;  %1488 = vmatpush1.bf16.msra.mxu0 %v5033_v28  ;;  %v601_v8 = vpack.c.bf16 %v5804_v3, %v5795_v61  ;;  %v5106_v27 = vld [vmem:[%s6843_s5 + $0x420] ss:$8 sps:$4 sm:$0xff]   ;;  %v5111_v28 = vld [vmem:[%s6843_s5 + $0x434] ss:$8 sps:$4 sm:$0xff]  }
 0x1fd   : > { %1035 = vmatprep.subr.bf16.mxu1 %v5038_v29  ;;  %1489 = vmatprep.subr.bf16.mxu0 %v5041_v30  ;;  %v5109_v29 = vld [vmem:[%s6843_s5 + $0x430] ss:$8 sps:$4 sm:$0xff]   ;;  %v5114_v30 = vld [vmem:[%s6843_s5 + $0x444] ss:$8 sps:$4 sm:$0xff]  }
 0x200   : > { %1036 = vmatpush1.bf16.msra.mxu1 %v5036_v31  ;;  %1490 = vmatpush1.bf16.msra.mxu0 %v5039_v32  ;;  %v5112_v31 = vld [vmem:[%s6843_s5 + $0x440] ss:$8 sps:$4 sm:$0xff]   ;;  %v5117_v32 = vld [vmem:[%s6843_s5 + $0x454] ss:$8 sps:$4 sm:$0xff]  }
 0x201   : > { %1037 = vmatprep.subr.bf16.mxu1 %v5044_v33  ;;  %1491 = vmatprep.subr.bf16.mxu0 %v5047_v34  ;;  %v5115_v33 = vld [vmem:[%s6843_s5 + $0x450] ss:$8 sps:$4 sm:$0xff]   ;;  %v5904_v34 = vpop.f32.mrb[24].mxu1 }
 0x204   : > { %1038 = vmatpush1.bf16.msra.mxu1 %v5042_v35  ;;  %1492 = vmatpush1.bf16.msra.mxu0 %v5045_v37  ;;  %v5120_v35 = vld [vmem:[%s6843_s5 + $0x464] ss:$8 sps:$4 sm:$0xff]   ;;  %v5909_v37 = vpop.f32.mrb[25].mxu1 }
 0x205   : > { %1039 = vmatprep.subr.bf16.mxu1 %v5050_v40  ;;  %1493 = vmatprep.subr.bf16.mxu0 %v5053_v41  ;;  %v5911_v40 = vpop.f32.mrb[26].mxu1 }
 0x206   : > { %v602_v41 = vpack.c.bf16 %v5911_v40, %v5904_v34  ;;  %v5220_v34 = vld [vmem:[%s6843_s5 + $0x678] ss:$8 sps:$4 sm:$0xff]   ;;  %v5225_v40 = vld [vmem:[%s6843_s5 + $0x68c] ss:$8 sps:$4 sm:$0xff]  }
 0x208   : > { %1040 = vmatpush1.bf16.msra.mxu1 %v5048_v42  ;;  %1494 = vmatpush1.bf16.msra.mxu0 %v5051_v43  ;;  %v5118_v42 = vld [vmem:[%s6843_s5 + $0x460] ss:$8 sps:$4 sm:$0xff]   ;;  %v5918_v43 = vpop.f32.mrb[27].mxu1 }
 0x209   : > { %1041 = vmatprep.subr.bf16.mxu1 %v5056_v44  ;;  %1495 = vmatprep.subr.bf16.mxu0 %v5059_v45  ;;  %v5123_v44 = vld [vmem:[%s6843_s5 + $0x474] ss:$8 sps:$4 sm:$0xff]   ;;  %v603_v45 = vpack.c.bf16 %v5918_v43, %v5909_v37  ;;  %v5958_v19 = vpop.f32.mrb[28].mxu1  ;;  %v5182_v43 = vld [vmem:[%s6843_s5 + $0x5b0] ss:$8 sps:$4 sm:$0xff]  }
 0x20a   : > { %v5184_v37 = vld [vmem:[%s6843_s5 + $0x5b4] ss:$8 sps:$4 sm:$0xff]  }
 0x20c   : > { %1042 = vmatpush1.bf16.msra.mxu1 %v5054_v46  ;;  %1496 = vmatpush1.bf16.msra.mxu0 %v5057_v47  ;;  %v4412_v46 = vld [vmem:[%s6843_s5 + $0x480] sm:$0xff]  ;;  %v5121_v47 = vld [vmem:[%s6843_s5 + $0x470] ss:$8 sps:$4 sm:$0xff]  }
 0x20d   : > { %1043 = vmatprep.subr.bf16.mxu1 %v5062_v48  ;;  %1497 = vmatprep.subr.bf16.mxu0 %v5065_v49  ;;  %v4442_v48 = vcombine.high %v4412_v46, %v4412_v46  ;;  %v4441_v49 = vcombine.low %v4412_v46, %v4412_v46  ;;  %v5190_v46 = vld [vmem:[%s6843_s5 + $0x5d4] ss:$8 sps:$4 sm:$0xff]  }
 0x210   : > { %1044 = vmatpush1.bf16.msra.mxu1 %v5060_v50  ;;  %1498 = vmatpush1.bf16.msra.mxu0 %v5063_v51  ;;  %v1703_v50 = vsel %vm460_vm2, %v4441_v49, 0  ;;  %v5128_v51 = vld [vmem:[%s6843_s5 + $0x48c] ss:$8 sps:$4 sm:$0xff]   ;;  %v5191_v49 = vld [vmem:[%s6843_s5 + $0x5e0] ss:$8 sps:$4 sm:$0xff]  }
 0x211   : > { %1045 = vmatprep.subr.bf16.mxu1 %v5068_v52  ;;  %1499 = vmatprep.subr.bf16.mxu0 %v5071_v53  ;;  %v5126_v52 = vld [vmem:[%s6843_s5 + $0x488] ss:$8 sps:$4 sm:$0xff]   ;;  %v5131_v53 = vld [vmem:[%s6843_s5 + $0x49c] ss:$8 sps:$4 sm:$0xff]  }
 0x214   : > { %1046 = vmatpush1.bf16.msra.mxu1 %v5066_v55  ;;  %1500 = vmatpush1.bf16.msra.mxu0 %v5069_v56  ;;  %v5134_v55 = vld [vmem:[%s6843_s5 + $0x4ac] ss:$8 sps:$4 sm:$0xff]   ;;  %v5963_v56 = vpop.f32.mrb[29].mxu1 }
 0x215   : > { %4260 = vmatprep.subr.msk.bf16.mxu1 %vm460_vm2, %v4259_v58  ;;  %1501 = vmatprep.subr.bf16.mxu0 %v5075_v59  ;;  %v5965_v58 = vpop.f32.mrb[30].mxu1 }
 0x216   : > { %v604_v59 = vpack.c.bf16 %v5965_v58, %v5958_v19  ;;  %v5972_v61 = vpop.f32.mrb[31].mxu1  ;;  %v5264_v19 = vld [vmem:[%s6843_s5 + $0x760] ss:$8 sps:$4 sm:$0xff]   ;;  %v5269_v58 = vld [vmem:[%s6843_s5 + $0x774] ss:$8 sps:$4 sm:$0xff]  }
 0x217   : > { %v605_v3 = vpack.c.bf16 %v5972_v61, %v5963_v56  ;;  %v5228_v56 = vld [vmem:[%s6843_s5 + $0x69c] ss:$8 sps:$4 sm:$0xff]   ;;  %v5226_v61 = vld [vmem:[%s6843_s5 + $0x698] ss:$8 sps:$4 sm:$0xff]  }
 0x218   : > { %1048 = vmatpush1.bf16.msra.mxu1 %v1014_v4  ;;  %1502 = vmatpush1.bf16.msra.mxu0 %v5073_v2  ;;  %v5140_v2 = vld [vmem:[%s6843_s5 + $0x4cc] ss:$8 sps:$4 sm:$0xff]   ;;  %v5979_v4 = vpop.f32.mrb[32].mxu1 }
 0x219   : > { %1503 = vmatprep.subr.bf16.mxu0 %v5079_v7  ;;  %v5981_v7 = vpop.f32.mrb[33].mxu1 }
 0x21b   : > { %1052 = vmatmul.mubr.bf16.vlgmr.msra.gmra.mrb[36].mxu1 %v590_v39  ;;  %v5088_v39 = vld [vmem:[%s6843_s5 + $0x3c0] ss:$8 sps:$4 sm:$0xff]  }
 0x21c   : > { %1504 = vmatpush1.bf16.msra.mxu0 %v5077_v10  ;;  %2757 = vmatprep.mubr.bf16.mxu1 %v5310_v0  ;;  %v5085_v0 = vld [vmem:[%s6843_s5 + $0x3b0] ss:$8 sps:$4 sm:$0xff]  }
 0x21d   : > { %4382 = vmatprep.subr.msk.bf16.mxu0 %vm460_vm2, %v4381_v11 }
 0x220   : > { %1506 = vmatpush1.bf16.msra.mxu0 %v1472_v13 }
 0x221   : > { %1708 = vmatprep.subr.bf16.mxu0 %v5084_v14  ;;  %v5141_v14 = vld [vmem:[%s6843_s5 + $0x4d8] ss:$8 sps:$4 sm:$0xff]  }
 0x223   : > { %1510 = vmatmul.mubr.bf16.vlgmr.msra.gmra.mrb[4].mxu0 %v596_v6  ;;  %v5096_v6 = vld [vmem:[%s6843_s5 + $0x3e4] ss:$8 sps:$4 sm:$0xff]  }
 0x224   : > { %1709 = vmatpush1.bf16.msra.mxu0 %v5082_v16  ;;  %4444 = vmatprep.mubr.msk.bf16.mxu0 %vm812_vm4, %v599_v24  ;;  %v5105_v24 = vld [vmem:[%s6843_s5 + $0x414] ss:$8 sps:$4 sm:$0xff]  }
 0x225   : > { %1710 = vmatprep.subr.bf16.mxu0 %v5087_v36  ;;  %v5146_v16 = vld [vmem:[%s6843_s5 + $0x4ec] ss:$8 sps:$4 sm:$0xff]   ;;  %v5144_v36 = vld [vmem:[%s6843_s5 + $0x4e8] ss:$8 sps:$4 sm:$0xff]  }
 0x228   : > { %1711 = vmatpush1.bf16.msra.mxu0 %v5085_v0  ;;  %v5149_v0 = vld [vmem:[%s6843_s5 + $0x4fc] ss:$8 sps:$4 sm:$0xff]  }
 0x229   : > { %1712 = vmatprep.subr.bf16.mxu0 %v5090_v38  ;;  %v5147_v38 = vld [vmem:[%s6843_s5 + $0x4f8] ss:$8 sps:$4 sm:$0xff]  }
 0x22c   : > { %1713 = vmatpush1.bf16.msra.mxu0 %v5088_v39  ;;  %v5152_v39 = vld [vmem:[%s6843_s5 + $0x50c] ss:$8 sps:$4 sm:$0xff]  }
 0x22d   : > { %1714 = vmatprep.subr.bf16.mxu0 %v5093_v1  ;;  %v5150_v1 = vld [vmem:[%s6843_s5 + $0x508] ss:$8 sps:$4 sm:$0xff]  }
 0x230   : > { %1715 = vmatpush1.bf16.msra.mxu0 %v5091_v5  ;;  %v5155_v5 = vld [vmem:[%s6843_s5 + $0x51c] ss:$8 sps:$4 sm:$0xff]  }
 0x231   : > { %1716 = vmatprep.subr.bf16.mxu0 %v5096_v6  ;;  %v5153_v6 = vld [vmem:[%s6843_s5 + $0x518] ss:$8 sps:$4 sm:$0xff]  }
 0x234   : > { %1717 = vmatpush1.bf16.msra.mxu0 %v5094_v17  ;;  %v5158_v17 = vld [vmem:[%s6843_s5 + $0x52c] ss:$8 sps:$4 sm:$0xff]  }
 0x235   : > { %1718 = vmatprep.subr.bf16.mxu0 %v5099_v18  ;;  %v5156_v18 = vld [vmem:[%s6843_s5 + $0x528] ss:$8 sps:$4 sm:$0xff]  }
 0x238   : > { %1719 = vmatpush1.bf16.msra.mxu0 %v5097_v21  ;;  %v5161_v21 = vld [vmem:[%s6843_s5 + $0x53c] ss:$8 sps:$4 sm:$0xff]  }
 0x239   : > { %1720 = vmatprep.subr.bf16.mxu0 %v5102_v22  ;;  %v5159_v22 = vld [vmem:[%s6843_s5 + $0x538] ss:$8 sps:$4 sm:$0xff]  }
 0x23c   : > { %1721 = vmatpush1.bf16.msra.mxu0 %v5100_v23  ;;  %v5164_v23 = vld [vmem:[%s6843_s5 + $0x54c] ss:$8 sps:$4 sm:$0xff]  }
 0x23d   : > { %1722 = vmatprep.subr.bf16.mxu0 %v5105_v24  ;;  %v5162_v24 = vld [vmem:[%s6843_s5 + $0x548] ss:$8 sps:$4 sm:$0xff]  }
 0x240   : > { %1723 = vmatpush1.bf16.msra.mxu0 %v5103_v25  ;;  %v5167_v25 = vld [vmem:[%s6843_s5 + $0x55c] ss:$8 sps:$4 sm:$0xff]  }
 0x241   : > { %1724 = vmatprep.subr.bf16.mxu0 %v5108_v26  ;;  %v4473_v26 = vld [vmem:[%s6843_s5 + $0x568] sm:$0xff] }
 0x244   : > { %1725 = vmatpush1.bf16.msra.mxu0 %v5106_v27  ;;  %v5165_v27 = vld [vmem:[%s6843_s5 + $0x558] ss:$8 sps:$4 sm:$0xff]  }
 0x245   : > { %1726 = vmatprep.subr.bf16.mxu0 %v5111_v28  ;;  %v4503_v28 = vcombine.high %v4473_v26, %v4473_v26 }
 0x248   : > { %1727 = vmatpush1.bf16.msra.mxu0 %v5109_v29  ;;  %v4502_v29 = vcombine.low %v4473_v26, %v4473_v26 }
 0x249   : > { %1728 = vmatprep.subr.bf16.mxu0 %v5114_v30 }
 0x24a   : > { %v1934_v30 = vsel %vm460_vm2, %v4502_v29, 0  ;;  %v5240_v29 = vld [vmem:[%s6843_s5 + $0x6dc] ss:$8 sps:$4 sm:$0xff]  }
 0x24c   : > { %1729 = vmatpush1.bf16.msra.mxu0 %v5112_v31  ;;  %v5172_v31 = vld [vmem:[%s6843_s5 + $0x574] ss:$8 sps:$4 sm:$0xff]  }
 0x24d   : > { %1730 = vmatprep.subr.bf16.mxu0 %v5117_v32  ;;  %v5170_v32 = vld [vmem:[%s6843_s5 + $0x570] ss:$8 sps:$4 sm:$0xff]  }
 0x250   : > { %1731 = vmatpush1.bf16.msra.mxu0 %v5115_v33  ;;  %v5175_v33 = vld [vmem:[%s6843_s5 + $0x584] ss:$8 sps:$4 sm:$0xff]  }
 0x251   : > { %1732 = vmatprep.subr.bf16.mxu0 %v5120_v35  ;;  %v5173_v35 = vld [vmem:[%s6843_s5 + $0x580] ss:$8 sps:$4 sm:$0xff]  }
 0x254   : > { %1733 = vmatpush1.bf16.msra.mxu0 %v5118_v42  ;;  %v5178_v42 = vld [vmem:[%s6843_s5 + $0x594] ss:$8 sps:$4 sm:$0xff]  }
 0x255   : > { %1734 = vmatprep.subr.bf16.mxu0 %v5123_v44  ;;  %v5187_v44 = vld [vmem:[%s6843_s5 + $0x5c4] ss:$8 sps:$4 sm:$0xff]  }
 0x258   : > { %1735 = vmatpush1.bf16.msra.mxu0 %v5121_v47  ;;  %v5188_v47 = vld [vmem:[%s6843_s5 + $0x5d0] ss:$8 sps:$4 sm:$0xff]  }
 0x259   : > { %4443 = vmatprep.subr.msk.bf16.mxu0 %vm460_vm2, %v4442_v48  ;;  %v5193_v48 = vld [vmem:[%s6843_s5 + $0x5e4] ss:$8 sps:$4 sm:$0xff]  }
 0x25c   : > { %1737 = vmatpush1.bf16.msra.mxu0 %v1703_v50  ;;  %v5196_v50 = vld [vmem:[%s6843_s5 + $0x5f4] ss:$8 sps:$4 sm:$0xff]  }
 0x25d   : > { %1939 = vmatprep.subr.bf16.mxu0 %v5128_v51  ;;  %v5194_v51 = vld [vmem:[%s6843_s5 + $0x5f0] ss:$8 sps:$4 sm:$0xff]  }
 0x25f   : > { %1741 = vmatmul.mubr.bf16.vlgmr.msra.gmra.mrb[4].mxu0 %v598_v20  ;;  %v5137_v20 = vld [vmem:[%s6843_s5 + $0x4bc] ss:$8 sps:$4 sm:$0xff]  }
 0x260   : > { %1940 = vmatpush1.bf16.msra.mxu0 %v5126_v52  ;;  %4505 = vmatprep.mubr.msk.bf16.mxu0 %vm812_vm4, %v601_v8  ;;  %v5983_v8 = vpop.f32.mrb[34].mxu1  ;;  %v5199_v52 = vld [vmem:[%s6843_s5 + $0x604] ss:$8 sps:$4 sm:$0xff]  }
 0x261   : > { %1941 = vmatprep.subr.bf16.mxu0 %v5131_v53  ;;  %v606_v10 = vpack.c.bf16 %v5983_v8, %v5979_v4  ;;  %v5990_v11 = vpop.f32.mrb[35].mxu1  ;;  %v5197_v53 = vld [vmem:[%s6843_s5 + $0x600] ss:$8 sps:$4 sm:$0xff]  }
 0x262   : > { %v607_v13 = vpack.c.bf16 %v5990_v11, %v5981_v7  ;;  %v5272_v7 = vld [vmem:[%s6843_s5 + $0x784] ss:$8 sps:$4 sm:$0xff]   ;;  %v5270_v11 = vld [vmem:[%s6843_s5 + $0x780] ss:$8 sps:$4 sm:$0xff]  }
 0x264   : > { %1942 = vmatpush1.bf16.msra.mxu0 %v5129_v54  ;;  %v5202_v54 = vld [vmem:[%s6843_s5 + $0x614] ss:$8 sps:$4 sm:$0xff]  }
 0x265   : > { %1943 = vmatprep.subr.bf16.mxu0 %v5134_v55  ;;  %v5200_v55 = vld [vmem:[%s6843_s5 + $0x610] ss:$8 sps:$4 sm:$0xff]  }
 0x268   : > { %1944 = vmatpush1.bf16.msra.mxu0 %v5132_v15  ;;  %v5205_v15 = vld [vmem:[%s6843_s5 + $0x624] ss:$8 sps:$4 sm:$0xff]  }
 0x269   : > { %1945 = vmatprep.subr.bf16.mxu0 %v5137_v20  ;;  %v5203_v20 = vld [vmem:[%s6843_s5 + $0x620] ss:$8 sps:$4 sm:$0xff]  }
 0x26c   : > { %1946 = vmatpush1.bf16.msra.mxu0 %v5135_v60  ;;  %v5208_v60 = vld [vmem:[%s6843_s5 + $0x634] ss:$8 sps:$4 sm:$0xff]  }
 0x26d   : > { %1947 = vmatprep.subr.bf16.mxu0 %v5140_v2  ;;  %v5206_v2 = vld [vmem:[%s6843_s5 + $0x630] ss:$8 sps:$4 sm:$0xff]  }
 0x270   : > { %1948 = vmatpush1.bf16.msra.mxu0 %v5138_v9  ;;  %v5211_v9 = vld [vmem:[%s6843_s5 + $0x644] ss:$8 sps:$4 sm:$0xff]  }
 0x271   : > { %1949 = vmatprep.subr.bf16.mxu0 %v5143_v12  ;;  %v4534_v12 = vld [vmem:[%s6843_s5 + $0x650] sm:$0xff] }
 0x274   : > { %1950 = vmatpush1.bf16.msra.mxu0 %v5141_v14  ;;  %v5209_v14 = vld [vmem:[%s6843_s5 + $0x640] ss:$8 sps:$4 sm:$0xff]  }
 0x275   : > { %1951 = vmatprep.subr.bf16.mxu0 %v5146_v16  ;;  %v4564_v16 = vcombine.high %v4534_v12, %v4534_v12 }
 0x278   : > { %1952 = vmatpush1.bf16.msra.mxu0 %v5144_v36  ;;  %v4563_v36 = vcombine.low %v4534_v12, %v4534_v12  ;;  %v5285_v12 = vld [vmem:[%s6843_s5 + $0x7d0] ss:$8 sps:$4 sm:$0xff]  }
 0x279   : > { %1953 = vmatprep.subr.bf16.mxu0 %v5149_v0  ;;  %v2680_v0 = vld [vmem:[%s6842_s4 + $0x8] sm:$0xff] }
 0x27a   : > { %2688 = vperm.xlu1 %4888, %v2680_v0   ;;  %v5291_v0 = vld [vmem:[%s6843_s5 + $0x7f0] ss:$8 sps:$4 sm:$0xff]  }
 0x27c   : > { %1954 = vmatpush1.bf16.msra.mxu0 %v5147_v38  ;;  %v2165_v38 = vsel %vm460_vm2, %v4563_v36, 0  ;;  %v5293_v36 = vld [vmem:[%s6843_s5 + $0x7f4] ss:$8 sps:$4 sm:$0xff]  }
 0x27d   : > { %1955 = vmatprep.subr.bf16.mxu0 %v5152_v39  ;;  %v5216_v39 = vld [vmem:[%s6843_s5 + $0x65c] ss:$8 sps:$4 sm:$0xff]  }
 0x280   : > { %1956 = vmatpush1.bf16.msra.mxu0 %v5150_v1  ;;  %v5214_v1 = vld [vmem:[%s6843_s5 + $0x658] ss:$8 sps:$4 sm:$0xff]  }
 0x281   : > { %1957 = vmatprep.subr.bf16.mxu0 %v5155_v5  ;;  %v5219_v5 = vld [vmem:[%s6843_s5 + $0x66c] ss:$8 sps:$4 sm:$0xff]  }
 0x284   : > { %1958 = vmatpush1.bf16.msra.mxu0 %v5153_v6  ;;  %v5217_v6 = vld [vmem:[%s6843_s5 + $0x668] ss:$8 sps:$4 sm:$0xff]  }
 0x285   : > { %1959 = vmatprep.subr.bf16.mxu0 %v5158_v17  ;;  %v5222_v17 = vld [vmem:[%s6843_s5 + $0x67c] ss:$8 sps:$4 sm:$0xff]  }
 0x288   : > { %1960 = vmatpush1.bf16.msra.mxu0 %v5156_v18  ;;  %v5229_v18 = vld [vmem:[%s6843_s5 + $0x6a8] ss:$8 sps:$4 sm:$0xff]  }
 0x289   : > { %1961 = vmatprep.subr.bf16.mxu0 %v5161_v21  ;;  %v5234_v21 = vld [vmem:[%s6843_s5 + $0x6bc] ss:$8 sps:$4 sm:$0xff]  }
 0x28c   : > { %1962 = vmatpush1.bf16.msra.mxu0 %v5159_v22  ;;  %v5232_v22 = vld [vmem:[%s6843_s5 + $0x6b8] ss:$8 sps:$4 sm:$0xff]  }
 0x28d   : > { %1963 = vmatprep.subr.bf16.mxu0 %v5164_v23  ;;  %v5237_v23 = vld [vmem:[%s6843_s5 + $0x6cc] ss:$8 sps:$4 sm:$0xff]  }
 0x290   : > { %1964 = vmatpush1.bf16.msra.mxu0 %v5162_v24 }
 0x291   : > { %1965 = vmatprep.subr.bf16.mxu0 %v5167_v25 }
 0x294   : > { %1966 = vmatpush1.bf16.msra.mxu0 %v5165_v27  ;;  %v5235_v27 = vld [vmem:[%s6843_s5 + $0x6c8] ss:$8 sps:$4 sm:$0xff]  }
 0x295   : > { %4504 = vmatprep.subr.msk.bf16.mxu0 %vm460_vm2, %v4503_v28 }
 0x298   : > { %1968 = vmatpush1.bf16.msra.mxu0 %v1934_v30  ;;  %v5238_v30 = vld [vmem:[%s6843_s5 + $0x6d8] ss:$8 sps:$4 sm:$0xff]  }
 0x299   : > { %2170 = vmatprep.subr.bf16.mxu0 %v5172_v31  ;;  %v5243_v31 = vld [vmem:[%s6843_s5 + $0x6ec] ss:$8 sps:$4 sm:$0xff]  }
 0x29b   : > { %1972 = vmatmul.mubr.bf16.vlgmr.msra.gmra.mrb[4].mxu0 %v600_v63  ;;  %v5179_v63 = vld [vmem:[%s6843_s5 + $0x5a0] ss:$8 sps:$4 sm:$0xff]  }
 0x29c   : > { %2171 = vmatpush1.bf16.msra.mxu0 %v5170_v32  ;;  %4566 = vmatprep.mubr.msk.bf16.mxu0 %vm812_vm4, %v603_v45  ;;  %v5185_v45 = vld [vmem:[%s6843_s5 + $0x5c0] ss:$8 sps:$4 sm:$0xff]  }
 0x29d   : > { %2172 = vmatprep.subr.bf16.mxu0 %v5175_v33  ;;  %v5241_v32 = vld [vmem:[%s6843_s5 + $0x6e8] ss:$8 sps:$4 sm:$0xff]   ;;  %v5246_v33 = vld [vmem:[%s6843_s5 + $0x6fc] ss:$8 sps:$4 sm:$0xff]  }
 0x2a0   : > { %2173 = vmatpush1.bf16.msra.mxu0 %v5173_v35  ;;  %v5244_v35 = vld [vmem:[%s6843_s5 + $0x6f8] ss:$8 sps:$4 sm:$0xff]  }
 0x2a1   : > { %2174 = vmatprep.subr.bf16.mxu0 %v5178_v42  ;;  %v5249_v42 = vld [vmem:[%s6843_s5 + $0x70c] ss:$8 sps:$4 sm:$0xff]  }
 0x2a4   : > { %2175 = vmatpush1.bf16.msra.mxu0 %v5176_v57  ;;  %v5247_v57 = vld [vmem:[%s6843_s5 + $0x708] ss:$8 sps:$4 sm:$0xff]  }
 0x2a5   : > { %2176 = vmatprep.subr.bf16.mxu0 %v5181_v62  ;;  %v5252_v62 = vld [vmem:[%s6843_s5 + $0x71c] ss:$8 sps:$4 sm:$0xff]  }
 0x2a8   : > { %2177 = vmatpush1.bf16.msra.mxu0 %v5179_v63  ;;  %v5250_v63 = vld [vmem:[%s6843_s5 + $0x718] ss:$8 sps:$4 sm:$0xff]  }
 0x2a9   : > { %2178 = vmatprep.subr.bf16.mxu0 %v5184_v37  ;;  %v5255_v37 = vld [vmem:[%s6843_s5 + $0x72c] ss:$8 sps:$4 sm:$0xff]  }
 0x2ac   : > { %2179 = vmatpush1.bf16.msra.mxu0 %v5182_v43  ;;  %v4595_v43 = vld [vmem:[%s6843_s5 + $0x738] sm:$0xff] }
 0x2ad   : > { %2180 = vmatprep.subr.bf16.mxu0 %v5187_v44  ;;  %v5253_v44 = vld [vmem:[%s6843_s5 + $0x728] ss:$8 sps:$4 sm:$0xff]  }
 0x2b0   : > { %2181 = vmatpush1.bf16.msra.mxu0 %v5185_v45  ;;  %v4625_v45 = vcombine.high %v4595_v43, %v4595_v43 }
 0x2b1   : > { %2182 = vmatprep.subr.bf16.mxu0 %v5190_v46  ;;  %v4624_v46 = vcombine.low %v4595_v43, %v4595_v43 }
 0x2b4   : > { %2183 = vmatpush1.bf16.msra.mxu0 %v5188_v47  ;;  %v2396_v47 = vsel %vm460_vm2, %v4624_v46, 0  ;;  %v2810_v46 = vld [vmem:[%s6844_s6 + $0x140] sm:$0xff] }
 0x2b5   : > { %2184 = vmatprep.subr.bf16.mxu0 %v5193_v48  ;;  %v5260_v48 = vld [vmem:[%s6843_s5 + $0x744] ss:$8 sps:$4 sm:$0xff]  }
 0x2b8   : > { %2185 = vmatpush1.bf16.msra.mxu0 %v5191_v49  ;;  %v5258_v49 = vld [vmem:[%s6843_s5 + $0x740] ss:$8 sps:$4 sm:$0xff]  }
 0x2b9   : > { %2186 = vmatprep.subr.bf16.mxu0 %v5196_v50  ;;  %v5263_v50 = vld [vmem:[%s6843_s5 + $0x754] ss:$8 sps:$4 sm:$0xff]  }
 0x2bc   : > { %2187 = vmatpush1.bf16.msra.mxu0 %v5194_v51  ;;  %v5261_v51 = vld [vmem:[%s6843_s5 + $0x750] ss:$8 sps:$4 sm:$0xff]  }
 0x2bd   : > { %2188 = vmatprep.subr.bf16.mxu0 %v5199_v52  ;;  %v5266_v52 = vld [vmem:[%s6843_s5 + $0x764] ss:$8 sps:$4 sm:$0xff]  }
 0x2c0   : > { %2189 = vmatpush1.bf16.msra.mxu0 %v5197_v53  ;;  %v5273_v53 = vld [vmem:[%s6843_s5 + $0x790] ss:$8 sps:$4 sm:$0xff]  }
 0x2c1   : > { %2190 = vmatprep.subr.bf16.mxu0 %v5202_v54  ;;  %v5278_v54 = vld [vmem:[%s6843_s5 + $0x7a4] ss:$8 sps:$4 sm:$0xff]  }
 0x2c4   : > { %2191 = vmatpush1.bf16.msra.mxu0 %v5200_v55  ;;  %v5276_v55 = vld [vmem:[%s6843_s5 + $0x7a0] ss:$8 sps:$4 sm:$0xff]  }
 0x2c5   : > { %2192 = vmatprep.subr.bf16.mxu0 %v5205_v15  ;;  %v5281_v15 = vld [vmem:[%s6843_s5 + $0x7b4] ss:$8 sps:$4 sm:$0xff]  }
 0x2c8   : > { %2193 = vmatpush1.bf16.msra.mxu0 %v5203_v20  ;;  %v5279_v20 = vld [vmem:[%s6843_s5 + $0x7b0] ss:$8 sps:$4 sm:$0xff]  }
 0x2c9   : > { %2194 = vmatprep.subr.bf16.mxu0 %v5208_v60  ;;  %v5284_v60 = vld [vmem:[%s6843_s5 + $0x7c4] ss:$8 sps:$4 sm:$0xff]  }
 0x2cc   : > { %2195 = vmatpush1.bf16.msra.mxu0 %v5206_v2  ;;  %v5282_v2 = vld [vmem:[%s6843_s5 + $0x7c0] ss:$8 sps:$4 sm:$0xff]  }
 0x2cd   : > { %2196 = vmatprep.subr.bf16.mxu0 %v5211_v9  ;;  %v5287_v9 = vld [vmem:[%s6843_s5 + $0x7d4] ss:$8 sps:$4 sm:$0xff]  }
 0x2d0   : > { %2197 = vmatpush1.bf16.msra.mxu0 %v5209_v14  ;;  %v5290_v14 = vld [vmem:[%s6843_s5 + $0x7e4] ss:$8 sps:$4 sm:$0xff]  }
 0x2d1   : > { %4565 = vmatprep.subr.msk.bf16.mxu0 %vm460_vm2, %v4564_v16  ;;  %v5288_v16 = vld [vmem:[%s6843_s5 + $0x7e0] ss:$8 sps:$4 sm:$0xff]  }
 0x2d4   : > { %2199 = vmatpush1.bf16.msra.mxu0 %v2165_v38  ;;  %v5296_v38 = vld [vmem:[%s6843_s5 + $0x804] ss:$8 sps:$4 sm:$0xff]  }
 0x2d5   : > { %2401 = vmatprep.subr.bf16.mxu0 %v5216_v39  ;;  %v5294_v39 = vld [vmem:[%s6843_s5 + $0x800] ss:$8 sps:$4 sm:$0xff]  }
 0x2d7   : > { %2203 = vmatmul.mubr.bf16.vlgmr.msra.gmra.mrb[4].mxu0 %v602_v41  ;;  %v5223_v41 = vld [vmem:[%s6843_s5 + $0x688] ss:$8 sps:$4 sm:$0xff]  }
 0x2d8   : > { %2402 = vmatpush1.bf16.msra.mxu0 %v5214_v1  ;;  %4627 = vmatprep.mubr.msk.bf16.mxu0 %vm812_vm4, %v605_v3  ;;  %v5231_v3 = vld [vmem:[%s6843_s5 + $0x6ac] ss:$8 sps:$4 sm:$0xff]  }
 0x2d9   : > { %2403 = vmatprep.subr.bf16.mxu0 %v5219_v5  ;;  %v5299_v1 = vld [vmem:[%s6843_s5 + $0x814] ss:$8 sps:$4 sm:$0xff]   ;;  %v4656_v5 = vld [vmem:[%s6843_s5 + $0x820] sm:$0xff] }
 0x2dc   : > { %2404 = vmatpush1.bf16.msra.mxu0 %v5217_v6  ;;  %v5297_v6 = vld [vmem:[%s6843_s5 + $0x810] ss:$8 sps:$4 sm:$0xff]  }
 0x2dd   : > { %2405 = vmatprep.subr.bf16.mxu0 %v5222_v17  ;;  %v4686_v17 = vcombine.high %v4656_v5, %v4656_v5 }
 0x2e0   : > { %2406 = vmatpush1.bf16.msra.mxu0 %v5220_v34  ;;  %v4685_v34 = vcombine.low %v4656_v5, %v4656_v5  ;;  %v2779_v5 = vld [vmem:[%s6844_s6 + $0x48] sm:$0xff] }
 0x2e1   : > { %2407 = vmatprep.subr.bf16.mxu0 %v5225_v40 }
 0x2e2   : > { %v2627_v40 = vsel %vm460_vm2, %v4685_v34, 0 }
 0x2e4   : > { %2408 = vmatpush1.bf16.msra.mxu0 %v5223_v41 }
 0x2e5   : > { %2409 = vmatprep.subr.bf16.mxu0 %v5228_v56  ;;  %v2684_v56 = vpop.permute.xlu0 %2683 }
 0x2e8   : > { %2410 = vmatpush1.bf16.msra.mxu0 %v5226_v61 }
 0x2e9   : > { %2411 = vmatprep.subr.bf16.mxu0 %v5231_v3 }
 0x2ec   : > { %2412 = vmatpush1.bf16.msra.mxu0 %v5229_v18 }
 0x2ed   : > { %2413 = vmatprep.subr.bf16.mxu0 %v5234_v21 }
 0x2ee   : > { %v6204_v24 = vpop.f32.mrb[36].mxu1 }
 0x2ef   : > { %v6206_v25 = vpop.f32.mrb[37].mxu1 }
 0x2f0   : > { %v6208_v26 = vpop.f32.mrb[38].mxu1  ;;  %2414 = vmatpush1.bf16.msra.mxu0 %v5232_v22 }
 0x2f1   : > { %v6213_v28 = vpop.f32.mrb[39].mxu1  ;;  %2415 = vmatprep.subr.bf16.mxu0 %v5237_v23 }
 0x2f4   : > { %2416 = vmatpush1.bf16.msra.mxu0 %v5235_v27 }
 0x2f5   : > { %2417 = vmatprep.subr.bf16.mxu0 %v5240_v29 }
 0x2f8   : > { %2418 = vmatpush1.bf16.msra.mxu0 %v5238_v30 }
 0x2f9   : > { %2419 = vmatprep.subr.bf16.mxu0 %v5243_v31  ;;  %v2689_v22 = vpop.permute.xlu1 %2688 }
 0x2fc   : > { %2420 = vmatpush1.bf16.msra.mxu0 %v5241_v32 }
 0x2fd   : > { %2421 = vmatprep.subr.bf16.mxu0 %v5246_v33 }
 0x300   : > { %2422 = vmatpush1.bf16.msra.mxu0 %v5244_v35 }
 0x301   : > { %2423 = vmatprep.subr.bf16.mxu0 %v5249_v42 }
 0x304   : > { %2424 = vmatpush1.bf16.msra.mxu0 %v5247_v57 }
 0x305   : > { %2425 = vmatprep.subr.bf16.mxu0 %v5252_v62 }
 0x308   : > { %2426 = vmatpush1.bf16.msra.mxu0 %v5250_v63  ;;  %v2786_v63 = vld [vmem:[%s6844_s6 + $0x80] sm:$0xff] }
 0x309   : > { %2427 = vmatprep.subr.bf16.mxu0 %v5255_v37  ;;  %v2794_v37 = vld [vmem:[%s6844_s6 + $0xc0] sm:$0xff] }
 0x30a   : > { %v4707_v43 = vcombine.high %v2786_v63, %v2794_v37 }
 0x30c   : > { %2428 = vmatpush1.bf16.msra.mxu0 %v5253_v44 }
 0x30d   : > { %4626 = vmatprep.subr.msk.bf16.mxu0 %vm460_vm2, %v4625_v45  ;;  %v2802_v45 = vld [vmem:[%s6844_s6 + $0x100] sm:$0xff] }
 0x310   : > { %2430 = vmatpush1.bf16.msra.mxu0 %v2396_v47  ;;  %v4706_v47 = vcombine.low %v2786_v63, %v2794_v37 }
 0x311   : > { %2632 = vmatprep.subr.bf16.mxu0 %v5260_v48  ;;  %v4723_v48 = vcombine.high %v2802_v45, %v2810_v46 }
 0x313   : > { %2434 = vmatmul.mubr.bf16.vlgmr.msra.gmra.mrb[4].mxu0 %v604_v59  ;;  %v5267_v59 = vld [vmem:[%s6843_s5 + $0x770] ss:$8 sps:$4 sm:$0xff]  }
 0x314   : > { %2633 = vmatpush1.bf16.msra.mxu0 %v5258_v49  ;;  %4688 = vmatprep.mubr.msk.bf16.mxu0 %vm812_vm4, %v607_v13  ;;  %v5275_v13 = vld [vmem:[%s6843_s5 + $0x794] ss:$8 sps:$4 sm:$0xff]   ;;  %v2818_v49 = vld [vmem:[%s6844_s6 + $0x180] sm:$0xff] }
 0x315   : > { %2634 = vmatprep.subr.bf16.mxu0 %v5263_v50  ;;  %v2826_v50 = vld [vmem:[%s6844_s6 + $0x1c0] sm:$0xff] }
 0x318   : > { %2635 = vmatpush1.bf16.msra.mxu0 %v5261_v51  ;;  %v4722_v51 = vcombine.low %v2802_v45, %v2810_v46 }
 0x319   : > { %2636 = vmatprep.subr.bf16.mxu0 %v5266_v52  ;;  %v4739_v52 = vcombine.high %v2818_v49, %v2826_v50 }
 0x31c   : > { %2637 = vmatpush1.bf16.msra.mxu0 %v5264_v19  ;;  %v2834_v19 = vld [vmem:[%s6844_s6 + $0x200] sm:$0xff] }
 0x31d   : > { %2638 = vmatprep.subr.bf16.mxu0 %v5269_v58  ;;  %v2842_v58 = vld [vmem:[%s6844_s6 + $0x240] sm:$0xff] }
 0x320   : > { %2639 = vmatpush1.bf16.msra.mxu0 %v5267_v59  ;;  %v4738_v59 = vcombine.low %v2818_v49, %v2826_v50 }
 0x321   : > { %2640 = vmatprep.subr.bf16.mxu0 %v5272_v7  ;;  %v4755_v7 = vcombine.high %v2834_v19, %v2842_v58 }
 0x324   : > { %2641 = vmatpush1.bf16.msra.mxu0 %v5270_v11  ;;  %v2850_v11 = vld [vmem:[%s6844_s6 + $0x280] sm:$0xff] }
 0x325   : > { %2642 = vmatprep.subr.bf16.mxu0 %v5275_v13  ;;  %v2858_v13 = vld [vmem:[%s6844_s6 + $0x2c0] sm:$0xff] }
 0x328   : > { %2643 = vmatpush1.bf16.msra.mxu0 %v5273_v53  ;;  %v4754_v53 = vcombine.low %v2834_v19, %v2842_v58 }
 0x329   : > { %2644 = vmatprep.subr.bf16.mxu0 %v5278_v54  ;;  %v4771_v54 = vcombine.high %v2850_v11, %v2858_v13 }
 0x32c   : > { %2645 = vmatpush1.bf16.msra.mxu0 %v5276_v55  ;;  %v2866_v55 = vld [vmem:[%s6844_s6 + $0x300] sm:$0xff] }
 0x32d   : > { %2646 = vmatprep.subr.bf16.mxu0 %v5281_v15  ;;  %v2874_v15 = vld [vmem:[%s6844_s6 + $0x340] sm:$0xff] }
 0x330   : > { %2647 = vmatpush1.bf16.msra.mxu0 %v5279_v20  ;;  %v4770_v20 = vcombine.low %v2850_v11, %v2858_v13 }
 0x331   : > { %2648 = vmatprep.subr.bf16.mxu0 %v5284_v60  ;;  %v4787_v60 = vcombine.high %v2866_v55, %v2874_v15 }
 0x334   : > { %2649 = vmatpush1.bf16.msra.mxu0 %v5282_v2  ;;  %v2882_v2 = vld [vmem:[%s6844_s6 + $0x380] sm:$0xff] }
 0x335   : > { %2650 = vmatprep.subr.bf16.mxu0 %v5287_v9  ;;  %v2890_v9 = vld [vmem:[%s6844_s6 + $0x3c0] sm:$0xff] }
 0x338   : > { %2651 = vmatpush1.bf16.msra.mxu0 %v5285_v12  ;;  %v4786_v12 = vcombine.low %v2866_v55, %v2874_v15 }
 0x339   : > { %2652 = vmatprep.subr.bf16.mxu0 %v5290_v14  ;;  %v4803_v14 = vcombine.high %v2882_v2, %v2890_v9 }
 0x33c   : > { %2653 = vmatpush1.bf16.msra.mxu0 %v5288_v16  ;;  %v4802_v16 = vcombine.low %v2882_v2, %v2890_v9 }
 0x33d   : > { %2654 = vmatprep.subr.bf16.mxu0 %v5293_v36  ;;  %v2898_v36 = vld [vmem:[%s6844_s6 + $0x400] sm:$0xff] }
 0x340   : > { %2655 = vmatpush1.bf16.msra.mxu0 %v5291_v0  ;;  %v2906_v0 = vld [vmem:[%s6844_s6 + $0x440] sm:$0xff] }
 0x341   : > { %2656 = vmatprep.subr.bf16.mxu0 %v5296_v38  ;;  %v4819_v38 = vcombine.high %v2898_v36, %v2906_v0 }
 0x344   : > { %2657 = vmatpush1.bf16.msra.mxu0 %v5294_v39  ;;  %v4818_v39 = vcombine.low %v2898_v36, %v2906_v0  ;;  %v2852_v0 = vld [vmem:[%s6844_s6 + $0x290] sm:$0xff] }
 0x345   : > { %2658 = vmatprep.subr.bf16.mxu0 %v5299_v1  ;;  %v2771_v1 = vld [vmem:[%s6844_s6 + $0x8] sm:$0xff] }
 0x348   : > { %2659 = vmatpush1.bf16.msra.mxu0 %v5297_v6  ;;  %v4693_v6 = vcombine.high %v2771_v1, %v2779_v5 }
 0x349   : > { %4687 = vmatprep.subr.msk.bf16.mxu0 %vm460_vm2, %v4686_v17  ;;  %v4692_v17 = vcombine.low %v2771_v1, %v2779_v5  ;;  %v2868_v5 = vld [vmem:[%s6844_s6 + $0x310] sm:$0xff] }
 0x34c   : > { %2661 = vmatpush1.bf16.msra.mxu0 %v2627_v40 }
 0x34f   : > { %2665 = vmatmul.mubr.bf16.vlgmr.msra.gmra.mrb[4].mxu0 %v606_v10 }
 0x422   : > { %v2666_v41 = vpop.f32.mrb[4].mxu0 }
 0x423   : > { %v4844_v61 = vadd.f32 %v2666_v41, %v6204_v24  ;;  %v2668_v3 = vpop.f32.mrb[5].mxu0 }
 0x424   : > { %v4845_v18 = vadd.f32 %v2668_v3, %v6206_v25  ;;  %v2670_v21 = vpop.f32.mrb[6].mxu0  ;;  %v2770_v25 = vld [vmem:[%s6844_s6] sm:$0xff] }
 0x425   : > { %v2691_v23 = vadd.f32 %v4844_v61, %v2684_v56  ;;  %v4846_v27 = vadd.f32 %v2670_v21, %v6208_v26  ;;  %v2672_v29 = vpop.f32.mrb[7].mxu0  ;;  %v2778_v26 = vld [vmem:[%s6844_s6 + $0x40] sm:$0xff]  ;;  %v2795_v61 = vld [vmem:[%s6844_s6 + $0xc8] sm:$0xff] }
 0x426   : > { %v2692_v30 = vadd.f32 %v4845_v18, %v2684_v56  ;;  %v4847_v31 = vadd.f32 %v2672_v29, %v6213_v28  ;;  %v4690_v28 = vcombine.low %v2770_v25, %v2778_v26  ;;  %v4691_v57 = vcombine.high %v2770_v25, %v2778_v26  ;;  %v2787_v56 = vld [vmem:[%s6844_s6 + $0x88] sm:$0xff] }
 0x427   : > { %v2693_v32 = vadd.f32 %v4846_v27, %v2689_v22  ;;  %v2695_v4 = vmax.f32 %v2691_v23, 0.0  ;;  %v2803_v23 = vld [vmem:[%s6844_s6 + $0x108] sm:$0xff]  ;;  %v4708_v29 = vcombine.low %v2787_v56, %v2795_v61 }
 0x428   : > { %v2694_v33 = vadd.f32 %v4847_v31, %v2689_v22  ;;  %v2696_v10 = vmax.f32 %v2692_v30, 0.0  ;;  %v4709_v22 = vcombine.high %v2787_v56, %v2795_v61  ;;  %v2811_v27 = vld [vmem:[%s6844_s6 + $0x148] sm:$0xff] }
 0x429   : > { %v2697_v8 = vmax.f32 %v2693_v32, 0.0  ;;  %v4725_v30 = vcombine.high %v2803_v23, %v2811_v27  ;;  %v2819_v31 = vld [vmem:[%s6844_s6 + $0x188] sm:$0xff] }
 0x42a   : > { %v2698_v35 = vmax.f32 %v2694_v33, 0.0  ;;  %v2827_v32 = vld [vmem:[%s6844_s6 + $0x1c8] sm:$0xff]  ;;  %v4724_v33 = vcombine.low %v2803_v23, %v2811_v27 }
 0x42b   : > { %v2699_v42 = vpack.c.bf16 %v2697_v8, %v2695_v4  ;;  %v4741_v4 = vcombine.high %v2819_v31, %v2827_v32  ;;  %v2835_v8 = vld [vmem:[%s6844_s6 + $0x208] sm:$0xff] }
 0x42c   : > { %v2700_v24 = vpack.c.bf16 %v2698_v35, %v2696_v10  ;;  %v2843_v10 = vld [vmem:[%s6844_s6 + $0x248] sm:$0xff]  ;;  %v4740_v35 = vcombine.low %v2819_v31, %v2827_v32 }
 0x42d   : > { %v2859_v25 = vld [vmem:[%s6844_s6 + $0x2c8] sm:$0xff]  ;;  %v4756_v26 = vcombine.low %v2835_v8, %v2843_v10 }
 0x42e   : > { %2702 = vrot.lane.b32.xlu1 %v2700_v24, %s5311_s9  ;;  %2725 = vmatprep.subr.bf16.mxu1 %v2700_v24  ;;  %v2851_v24 = vld [vmem:[%s6844_s6 + $0x288] sm:$0xff] }
 0x42f   : > { %2726 = vmatpush1.bf16.msra.mxu1 %v2699_v42  ;;  %v4757_v42 = vcombine.high %v2835_v8, %v2843_v10  ;;  %v4772_v63 = vcombine.low %v2851_v24, %v2859_v25 }
 0x430   : > { %3637 = vmatprep.subr.bf16.mxu1 %v4691_v57  ;;  %v2867_v57 = vld [vmem:[%s6844_s6 + $0x308] sm:$0xff] }
 0x4a0   : > { %v2703_v62 = vpop.permute.xlu1 %2702 }
 0x4a1   : > { %2705 = vxpose.xlu0.c.b16.start.end [1/1] (short) (narrow) %v2703_v62, 16  ;;  %v2875_v62 = vld [vmem:[%s6844_s6 + $0x348] sm:$0xff] }
 0x4a2   : > { %v4789_v37 = vcombine.high %v2867_v57, %v2875_v62  ;;  %v4788_v45 = vcombine.low %v2867_v57, %v2875_v62 }
 0x507   : > { %v2713_v44 = vpop.trf.xlu0 }
 0x508   : > { %4689 = vmatmul.mubr.msk.bf16.vlgmr.msra.gmra.mrb[40].mxu1 %vm2721_vm5, %v2713_v44  ;;  %v2891_v44 = vld [vmem:[%s6844_s6 + $0x3c8] sm:$0xff] }
 0x509   : > { %3638 = vmatpush1.bf16.msra.mxu1 %v4690_v28  ;;  %v4773_v28 = vcombine.high %v2851_v24, %v2859_v25 }
 0x50a   : > { %3639 = vmatprep.subr.bf16.mxu1 %v4707_v43  ;;  %v2883_v43 = vld [vmem:[%s6844_s6 + $0x388] sm:$0xff] }
 0x50b   : > { %v4805_v46 = vcombine.high %v2883_v43, %v2891_v44  ;;  %v4804_v49 = vcombine.low %v2883_v43, %v2891_v44 }
 0x50d   : > { %3640 = vmatpush1.bf16.msra.mxu1 %v4706_v47  ;;  %v2899_v47 = vld [vmem:[%s6844_s6 + $0x408] sm:$0xff] }
 0x50e   : > { %3641 = vmatprep.subr.bf16.mxu1 %v4723_v48  ;;  %v2907_v48 = vld [vmem:[%s6844_s6 + $0x448] sm:$0xff] }
 0x50f   : > { %v4821_v50 = vcombine.high %v2899_v47, %v2907_v48  ;;  %v4820_v19 = vcombine.low %v2899_v47, %v2907_v48 }
 0x511   : > { %3642 = vmatpush1.bf16.msra.mxu1 %v4722_v51  ;;  %v2772_v51 = vld [vmem:[%s6844_s6 + $0x10] sm:$0xff] }
 0x512   : > { %3643 = vmatprep.subr.bf16.mxu1 %v4739_v52  ;;  %v2780_v52 = vld [vmem:[%s6844_s6 + $0x50] sm:$0xff] }
 0x513   : > { %v4695_v58 = vcombine.high %v2772_v51, %v2780_v52  ;;  %v4694_v11 = vcombine.low %v2772_v51, %v2780_v52 }
 0x515   : > { %3644 = vmatpush1.bf16.msra.mxu1 %v4738_v59  ;;  %v2788_v59 = vld [vmem:[%s6844_s6 + $0x90] sm:$0xff] }
 0x516   : > { %3645 = vmatprep.subr.bf16.mxu1 %v4755_v7  ;;  %v2796_v7 = vld [vmem:[%s6844_s6 + $0xd0] sm:$0xff] }
 0x517   : > { %v4711_v13 = vcombine.high %v2788_v59, %v2796_v7  ;;  %v4710_v55 = vcombine.low %v2788_v59, %v2796_v7 }
 0x519   : > { %3646 = vmatpush1.bf16.msra.mxu1 %v4754_v53  ;;  %v2804_v53 = vld [vmem:[%s6844_s6 + $0x110] sm:$0xff] }
 0x51a   : > { %3647 = vmatprep.subr.bf16.mxu1 %v4771_v54  ;;  %v2812_v54 = vld [vmem:[%s6844_s6 + $0x150] sm:$0xff] }
 0x51b   : > { %v4727_v15 = vcombine.high %v2804_v53, %v2812_v54  ;;  %v4726_v2 = vcombine.low %v2804_v53, %v2812_v54 }
 0x51d   : > { %3648 = vmatpush1.bf16.msra.mxu1 %v4770_v20  ;;  %v2820_v20 = vld [vmem:[%s6844_s6 + $0x190] sm:$0xff] }
 0x51e   : > { %3649 = vmatprep.subr.bf16.mxu1 %v4787_v60  ;;  %v2828_v60 = vld [vmem:[%s6844_s6 + $0x1d0] sm:$0xff] }
 0x51f   : > { %v4743_v9 = vcombine.high %v2820_v20, %v2828_v60 }
 0x521   : > { %3650 = vmatpush1.bf16.msra.mxu1 %v4786_v12  ;;  %v2836_v12 = vld [vmem:[%s6844_s6 + $0x210] sm:$0xff] }
 0x522   : > { %3651 = vmatprep.subr.bf16.mxu1 %v4803_v14  ;;  %v2844_v14 = vld [vmem:[%s6844_s6 + $0x250] sm:$0xff] }
 0x523   : > { %v4759_v36 = vcombine.high %v2836_v12, %v2844_v14 }
 0x525   : > { %3652 = vmatpush1.bf16.msra.mxu1 %v4802_v16  ;;  %v4742_v16 = vcombine.low %v2820_v20, %v2828_v60 }
 0x526   : > { %3653 = vmatprep.subr.bf16.mxu1 %v4819_v38  ;;  %v2860_v38 = vld [vmem:[%s6844_s6 + $0x2d0] sm:$0xff] }
 0x527   : > { %v4775_v1 = vcombine.high %v2852_v0, %v2860_v38 }
 0x529   : > { %3654 = vmatpush1.bf16.msra.mxu1 %v4818_v39  ;;  %v4758_v39 = vcombine.low %v2836_v12, %v2844_v14 }
 0x52a   : > { %3680 = vmatprep.subr.bf16.mxu1 %v4693_v6  ;;  %v2876_v6 = vld [vmem:[%s6844_s6 + $0x350] sm:$0xff] }
 0x52b   : > { %v4790_v56 = vcombine.low %v2868_v5, %v2876_v6 }
 0x5db   : > { %v2759_v34 = vpop.f32.mrb[40].mxu1 }
 0x5dc   : > { %v2761_v40 = vpop.f32.mrb[41].mxu1 }
 0x5dd   : > { %v2763_v41 = vpop.f32.mrb[42].mxu1 }
 0x5de   : > { %v6426_v3 = vpack.c.bf16 %v2763_v41, %v2759_v34  ;;  %v2765_v18 = vpop.f32.mrb[43].mxu1  ;;  %v4791_v34 = vcombine.high %v2868_v5, %v2876_v6  ;;  %v2892_v41 = vld [vmem:[%s6844_s6 + $0x3d0] sm:$0xff] }
 0x5df   : > { %v6428_v21 = vpack.c.bf16 %v2765_v18, %v2761_v40  ;;  %v2884_v40 = vld [vmem:[%s6844_s6 + $0x390] sm:$0xff] }
 0x5e0   : > { %v4807_v61 = vcombine.high %v2884_v40, %v2892_v41  ;;  %v2900_v18 = vld [vmem:[%s6844_s6 + $0x410] sm:$0xff]  ;;  %v4806_v23 = vcombine.low %v2884_v40, %v2892_v41 }
 0x5e1   : > { %4834 = vmatprep.mubr.msk.bf16.mxu1 %vm2721_vm5, %v6428_v21 }
 0x5e2   : > { %3670 = vmatmul.mubr.bf16.vlgmr.msra.gmra.mrb[44].mxu1 %v6426_v3 }
 0x5e3   : > { %3681 = vmatpush1.bf16.msra.mxu1 %v4692_v17  ;;  %4835 = vmatprep.mubr.msk.bf16.mxu1 %vm2721_vm5, %v6428_v21  ;;  %v4774_v17 = vcombine.low %v2852_v0, %v2860_v38 }
 0x5e4   : > { %3682 = vmatprep.subr.bf16.mxu1 %v4709_v22  ;;  %v2908_v22 = vld [vmem:[%s6844_s6 + $0x450] sm:$0xff] }
 0x5e5   : > { %v4823_v27 = vcombine.high %v2900_v18, %v2908_v22  ;;  %v4822_v31 = vcombine.low %v2900_v18, %v2908_v22 }
 0x5e7   : > { %3683 = vmatpush1.bf16.msra.mxu1 %v4708_v29  ;;  %v2773_v29 = vld [vmem:[%s6844_s6 + $0x18] sm:$0xff] }
 0x5e8   : > { %3684 = vmatprep.subr.bf16.mxu1 %v4725_v30  ;;  %v2781_v30 = vld [vmem:[%s6844_s6 + $0x58] sm:$0xff] }
 0x5e9   : > { %v4697_v32 = vcombine.high %v2773_v29, %v2781_v30  ;;  %v4696_v8 = vcombine.low %v2773_v29, %v2781_v30 }
 0x5eb   : > { %3685 = vmatpush1.bf16.msra.mxu1 %v4724_v33  ;;  %v2789_v33 = vld [vmem:[%s6844_s6 + $0x98] sm:$0xff] }
 0x5ec   : > { %3686 = vmatprep.subr.bf16.mxu1 %v4741_v4  ;;  %v2797_v4 = vld [vmem:[%s6844_s6 + $0xd8] sm:$0xff] }
 0x5ed   : > { %v4713_v10 = vcombine.high %v2789_v33, %v2797_v4  ;;  %v4712_v24 = vcombine.low %v2789_v33, %v2797_v4 }
 0x5ef   : > { %3687 = vmatpush1.bf16.msra.mxu1 %v4740_v35  ;;  %v2805_v35 = vld [vmem:[%s6844_s6 + $0x118] sm:$0xff] }
 0x5f0   : > { %3688 = vmatprep.subr.bf16.mxu1 %v4757_v42  ;;  %v2813_v42 = vld [vmem:[%s6844_s6 + $0x158] sm:$0xff] }
 0x5f1   : > { %v4729_v25 = vcombine.high %v2805_v35, %v2813_v42  ;;  %v4728_v57 = vcombine.low %v2805_v35, %v2813_v42 }
 0x5f3   : > { %3689 = vmatpush1.bf16.msra.mxu1 %v4756_v26  ;;  %v2821_v26 = vld [vmem:[%s6844_s6 + $0x198] sm:$0xff] }
 0x5f4   : > { %3690 = vmatprep.subr.bf16.mxu1 %v4773_v28  ;;  %v2829_v28 = vld [vmem:[%s6844_s6 + $0x1d8] sm:$0xff] }
 0x5f5   : > { %v4745_v62 = vcombine.high %v2821_v26, %v2829_v28  ;;  %v4744_v43 = vcombine.low %v2821_v26, %v2829_v28 }
 0x5f7   : > { %3691 = vmatpush1.bf16.msra.mxu1 %v4772_v63  ;;  %v2837_v63 = vld [vmem:[%s6844_s6 + $0x218] sm:$0xff] }
 0x5f8   : > { %3692 = vmatprep.subr.bf16.mxu1 %v4789_v37  ;;  %v2845_v37 = vld [vmem:[%s6844_s6 + $0x258] sm:$0xff] }
 0x5f9   : > { %v4761_v44 = vcombine.high %v2837_v63, %v2845_v37  ;;  %v4760_v47 = vcombine.low %v2837_v63, %v2845_v37 }
 0x5fb   : > { %3693 = vmatpush1.bf16.msra.mxu1 %v4788_v45  ;;  %v2853_v45 = vld [vmem:[%s6844_s6 + $0x298] sm:$0xff] }
 0x5fc   : > { %3694 = vmatprep.subr.bf16.mxu1 %v4805_v46  ;;  %v2861_v46 = vld [vmem:[%s6844_s6 + $0x2d8] sm:$0xff] }
 0x5fd   : > { %v4777_v48 = vcombine.high %v2853_v45, %v2861_v46  ;;  %v4776_v51 = vcombine.low %v2853_v45, %v2861_v46 }
 0x5ff   : > { %3695 = vmatpush1.bf16.msra.mxu1 %v4804_v49  ;;  %v2869_v49 = vld [vmem:[%s6844_s6 + $0x318] sm:$0xff] }
 0x600   : > { %3696 = vmatprep.subr.bf16.mxu1 %v4821_v50  ;;  %v2877_v50 = vld [vmem:[%s6844_s6 + $0x358] sm:$0xff] }
 0x601   : > { %v4793_v52 = vcombine.high %v2869_v49, %v2877_v50  ;;  %v4792_v59 = vcombine.low %v2869_v49, %v2877_v50 }
 0x603   : > { %3697 = vmatpush1.bf16.msra.mxu1 %v4820_v19  ;;  %v2885_v19 = vld [vmem:[%s6844_s6 + $0x398] sm:$0xff] }
 0x604   : > { %3723 = vmatprep.subr.bf16.mxu1 %v4695_v58  ;;  %v2893_v58 = vld [vmem:[%s6844_s6 + $0x3d8] sm:$0xff] }
 0x605   : > { %v4809_v7 = vcombine.high %v2885_v19, %v2893_v58  ;;  %v4808_v53 = vcombine.low %v2885_v19, %v2893_v58 }
 0x606   : > { %3713 = vmatmul.mubr.bf16.vlgmr.msra.gmra.mrb[48].mxu1 %v6426_v3 }
 0x607   : > { %3724 = vmatpush1.bf16.msra.mxu1 %v4694_v11  ;;  %4836 = vmatprep.mubr.msk.bf16.mxu1 %vm2721_vm5, %v6428_v21  ;;  %v2901_v11 = vld [vmem:[%s6844_s6 + $0x418] sm:$0xff] }
 0x608   : > { %3725 = vmatprep.subr.bf16.mxu1 %v4711_v13  ;;  %v2909_v13 = vld [vmem:[%s6844_s6 + $0x458] sm:$0xff] }
 0x609   : > { %v4825_v54 = vcombine.high %v2901_v11, %v2909_v13  ;;  %v4824_v20 = vcombine.low %v2901_v11, %v2909_v13 }
 0x60b   : > { %3726 = vmatpush1.bf16.msra.mxu1 %v4710_v55  ;;  %v2774_v55 = vld [vmem:[%s6844_s6 + $0x20] sm:$0xff] }
 0x60c   : > { %3727 = vmatprep.subr.bf16.mxu1 %v4727_v15  ;;  %v2782_v15 = vld [vmem:[%s6844_s6 + $0x60] sm:$0xff] }
 0x60d   : > { %v4699_v60 = vcombine.high %v2774_v55, %v2782_v15  ;;  %v4698_v12 = vcombine.low %v2774_v55, %v2782_v15 }
 0x60f   : > { %3728 = vmatpush1.bf16.msra.mxu1 %v4726_v2  ;;  %v2790_v2 = vld [vmem:[%s6844_s6 + $0xa0] sm:$0xff] }
 0x610   : > { %3729 = vmatprep.subr.bf16.mxu1 %v4743_v9  ;;  %v2798_v9 = vld [vmem:[%s6844_s6 + $0xe0] sm:$0xff] }
 0x611   : > { %v4715_v14 = vcombine.high %v2790_v2, %v2798_v9  ;;  %v4714_v0 = vcombine.low %v2790_v2, %v2798_v9 }
 0x613   : > { %3730 = vmatpush1.bf16.msra.mxu1 %v4742_v16  ;;  %v2806_v16 = vld [vmem:[%s6844_s6 + $0x120] sm:$0xff] }
 0x614   : > { %3731 = vmatprep.subr.bf16.mxu1 %v4759_v36  ;;  %v2814_v36 = vld [vmem:[%s6844_s6 + $0x160] sm:$0xff] }
 0x615   : > { %v4731_v38 = vcombine.high %v2806_v16, %v2814_v36  ;;  %v4730_v5 = vcombine.low %v2806_v16, %v2814_v36 }
 0x617   : > { %3732 = vmatpush1.bf16.msra.mxu1 %v4758_v39  ;;  %v2822_v39 = vld [vmem:[%s6844_s6 + $0x1a0] sm:$0xff] }
 0x618   : > { %3733 = vmatprep.subr.bf16.mxu1 %v4775_v1  ;;  %v2830_v1 = vld [vmem:[%s6844_s6 + $0x1e0] sm:$0xff] }
 0x619   : > { %v4747_v6 = vcombine.high %v2822_v39, %v2830_v1  ;;  %v4746_v40 = vcombine.low %v2822_v39, %v2830_v1 }
 0x61b   : > { %3734 = vmatpush1.bf16.msra.mxu1 %v4774_v17  ;;  %v2838_v17 = vld [vmem:[%s6844_s6 + $0x220] sm:$0xff] }
 0x61c   : > { %3735 = vmatprep.subr.bf16.mxu1 %v4791_v34  ;;  %v2846_v34 = vld [vmem:[%s6844_s6 + $0x260] sm:$0xff] }
 0x61d   : > { %v4763_v41 = vcombine.high %v2838_v17, %v2846_v34  ;;  %v4762_v18 = vcombine.low %v2838_v17, %v2846_v34 }
 0x61f   : > { %3736 = vmatpush1.bf16.msra.mxu1 %v4790_v56  ;;  %v2854_v56 = vld [vmem:[%s6844_s6 + $0x2a0] sm:$0xff] }
 0x620   : > { %3737 = vmatprep.subr.bf16.mxu1 %v4807_v61  ;;  %v2862_v61 = vld [vmem:[%s6844_s6 + $0x2e0] sm:$0xff] }
 0x621   : > { %v4779_v22 = vcombine.high %v2854_v56, %v2862_v61  ;;  %v4778_v29 = vcombine.low %v2854_v56, %v2862_v61 }
 0x623   : > { %3738 = vmatpush1.bf16.msra.mxu1 %v4806_v23  ;;  %v2870_v23 = vld [vmem:[%s6844_s6 + $0x320] sm:$0xff] }
 0x624   : > { %3739 = vmatprep.subr.bf16.mxu1 %v4823_v27  ;;  %v2878_v27 = vld [vmem:[%s6844_s6 + $0x360] sm:$0xff] }
 0x625   : > { %v4795_v30 = vcombine.high %v2870_v23, %v2878_v27  ;;  %v4794_v33 = vcombine.low %v2870_v23, %v2878_v27 }
 0x627   : > { %3740 = vmatpush1.bf16.msra.mxu1 %v4822_v31  ;;  %v2886_v31 = vld [vmem:[%s6844_s6 + $0x3a0] sm:$0xff] }
 0x628   : > { %3766 = vmatprep.subr.bf16.mxu1 %v4697_v32  ;;  %v2894_v32 = vld [vmem:[%s6844_s6 + $0x3e0] sm:$0xff] }
 0x629   : > { %v4811_v4 = vcombine.high %v2886_v31, %v2894_v32  ;;  %v4810_v35 = vcombine.low %v2886_v31, %v2894_v32 }
 0x62a   : > { %3756 = vmatmul.mubr.bf16.vlgmr.msra.gmra.mrb[52].mxu1 %v6426_v3 }
 0x62b   : > { %3767 = vmatpush1.bf16.msra.mxu1 %v4696_v8  ;;  %4837 = vmatprep.mubr.msk.bf16.mxu1 %vm2721_vm5, %v6428_v21  ;;  %v2902_v8 = vld [vmem:[%s6844_s6 + $0x420] sm:$0xff] }
 0x62c   : > { %3768 = vmatprep.subr.bf16.mxu1 %v4713_v10  ;;  %v2910_v10 = vld [vmem:[%s6844_s6 + $0x460] sm:$0xff] }
 0x62d   : > { %v4827_v42 = vcombine.high %v2902_v8, %v2910_v10  ;;  %v4826_v26 = vcombine.low %v2902_v8, %v2910_v10 }
 0x62f   : > { %3769 = vmatpush1.bf16.msra.mxu1 %v4712_v24  ;;  %v2775_v24 = vld [vmem:[%s6844_s6 + $0x28] sm:$0xff] }
 0x630   : > { %3770 = vmatprep.subr.bf16.mxu1 %v4729_v25  ;;  %v2783_v25 = vld [vmem:[%s6844_s6 + $0x68] sm:$0xff] }
 0x631   : > { %v4701_v28 = vcombine.high %v2775_v24, %v2783_v25  ;;  %v4700_v63 = vcombine.low %v2775_v24, %v2783_v25 }
 0x633   : > { %3771 = vmatpush1.bf16.msra.mxu1 %v4728_v57  ;;  %v2791_v57 = vld [vmem:[%s6844_s6 + $0xa8] sm:$0xff] }
 0x634   : > { %3772 = vmatprep.subr.bf16.mxu1 %v4745_v62  ;;  %v2799_v62 = vld [vmem:[%s6844_s6 + $0xe8] sm:$0xff] }
 0x635   : > { %v4717_v37 = vcombine.high %v2791_v57, %v2799_v62  ;;  %v4716_v45 = vcombine.low %v2791_v57, %v2799_v62  ;;  %v3981_v62 = vlaneseq }
 0x637   : > { %3773 = vmatpush1.bf16.msra.mxu1 %v4744_v43  ;;  %v2807_v43 = vld [vmem:[%s6844_s6 + $0x128] sm:$0xff] }
 0x638   : > { %3774 = vmatprep.subr.bf16.mxu1 %v4761_v44  ;;  %v2815_v44 = vld [vmem:[%s6844_s6 + $0x168] sm:$0xff] }
 0x639   : > { %v4733_v46 = vcombine.high %v2807_v43, %v2815_v44  ;;  %v4732_v49 = vcombine.low %v2807_v43, %v2815_v44  ;;  %v2912_v43 = vld [vmem:[%s6844_s6 + $0x470] sm:$0xff] }
 0x63b   : > { %3775 = vmatpush1.bf16.msra.mxu1 %v4760_v47  ;;  %v2823_v47 = vld [vmem:[%s6844_s6 + $0x1a8] sm:$0xff] }
 0x63c   : > { %3776 = vmatprep.subr.bf16.mxu1 %v4777_v48  ;;  %v2831_v48 = vld [vmem:[%s6844_s6 + $0x1e8] sm:$0xff] }
 0x63d   : > { %v4749_v50 = vcombine.high %v2823_v47, %v2831_v48  ;;  %v4748_v19 = vcombine.low %v2823_v47, %v2831_v48  ;;  %v2777_v47 = vld [vmem:[%s6844_s6 + $0x38] sm:$0xff] }
 0x63e   : > { %v2785_v48 = vld [vmem:[%s6844_s6 + $0x78] sm:$0xff] }
 0x63f   : > { %3777 = vmatpush1.bf16.msra.mxu1 %v4776_v51  ;;  %v2839_v51 = vld [vmem:[%s6844_s6 + $0x228] sm:$0xff] }
 0x640   : > { %3778 = vmatprep.subr.bf16.mxu1 %v4793_v52  ;;  %v2847_v52 = vld [vmem:[%s6844_s6 + $0x268] sm:$0xff] }
 0x641   : > { %v4765_v58 = vcombine.high %v2839_v51, %v2847_v52  ;;  %v4764_v11 = vcombine.low %v2839_v51, %v2847_v52  ;;  %v2793_v52 = vld [vmem:[%s6844_s6 + $0xb8] sm:$0xff] }
 0x643   : > { %3779 = vmatpush1.bf16.msra.mxu1 %v4792_v59  ;;  %v2855_v59 = vld [vmem:[%s6844_s6 + $0x2a8] sm:$0xff] }
 0x644   : > { %3780 = vmatprep.subr.bf16.mxu1 %v4809_v7  ;;  %v2863_v7 = vld [vmem:[%s6844_s6 + $0x2e8] sm:$0xff] }
 0x645   : > { %v4781_v13 = vcombine.high %v2855_v59, %v2863_v7  ;;  %v4780_v55 = vcombine.low %v2855_v59, %v2863_v7 }
 0x647   : > { %3781 = vmatpush1.bf16.msra.mxu1 %v4808_v53  ;;  %v2871_v53 = vld [vmem:[%s6844_s6 + $0x328] sm:$0xff] }
 0x648   : > { %3782 = vmatprep.subr.bf16.mxu1 %v4825_v54  ;;  %v2879_v54 = vld [vmem:[%s6844_s6 + $0x368] sm:$0xff] }
 0x649   : > { %v4797_v15 = vcombine.high %v2871_v53, %v2879_v54  ;;  %v4796_v2 = vcombine.low %v2871_v53, %v2879_v54 }
 0x64b   : > { %3783 = vmatpush1.bf16.msra.mxu1 %v4824_v20  ;;  %v2887_v20 = vld [vmem:[%s6844_s6 + $0x3a8] sm:$0xff] }
 0x64c   : > { %3809 = vmatprep.subr.bf16.mxu1 %v4699_v60  ;;  %v2895_v60 = vld [vmem:[%s6844_s6 + $0x3e8] sm:$0xff] }
 0x64d   : > { %v4813_v9 = vcombine.high %v2887_v20, %v2895_v60  ;;  %v4812_v16 = vcombine.low %v2887_v20, %v2895_v60  ;;  %v2817_v20 = vld [vmem:[%s6844_s6 + $0x178] sm:$0xff] }
 0x64e   : > { %3799 = vmatmul.mubr.bf16.vlgmr.msra.gmra.mrb[56].mxu1 %v6426_v3 }
 0x64f   : > { %3810 = vmatpush1.bf16.msra.mxu1 %v4698_v12  ;;  %4838 = vmatprep.mubr.msk.bf16.mxu1 %vm2721_vm5, %v6428_v21  ;;  %v2903_v12 = vld [vmem:[%s6844_s6 + $0x428] sm:$0xff] }
 0x650   : > { %3811 = vmatprep.subr.bf16.mxu1 %v4715_v14  ;;  %v2911_v14 = vld [vmem:[%s6844_s6 + $0x468] sm:$0xff] }
 0x651   : > { %v4829_v36 = vcombine.high %v2903_v12, %v2911_v14  ;;  %v4828_v39 = vcombine.low %v2903_v12, %v2911_v14  ;;  %v2833_v12 = vld [vmem:[%s6844_s6 + $0x1f8] sm:$0xff] }
 0x653   : > { %3812 = vmatpush1.bf16.msra.mxu1 %v4714_v0  ;;  %v2776_v0 = vld [vmem:[%s6844_s6 + $0x30] sm:$0xff] }
 0x654   : > { %3813 = vmatprep.subr.bf16.mxu1 %v4731_v38  ;;  %v2784_v38 = vld [vmem:[%s6844_s6 + $0x70] sm:$0xff] }
 0x655   : > { %v4703_v1 = vcombine.high %v2776_v0, %v2784_v38  ;;  %v4702_v17 = vcombine.low %v2776_v0, %v2784_v38 }
 0x657   : > { %3814 = vmatpush1.bf16.msra.mxu1 %v4730_v5  ;;  %v2792_v5 = vld [vmem:[%s6844_s6 + $0xb0] sm:$0xff] }
 0x658   : > { %3815 = vmatprep.subr.bf16.mxu1 %v4747_v6  ;;  %v2800_v6 = vld [vmem:[%s6844_s6 + $0xf0] sm:$0xff] }
 0x659   : > { %v4719_v34 = vcombine.high %v2792_v5, %v2800_v6  ;;  %v4718_v56 = vcombine.low %v2792_v5, %v2800_v6 }
 0x65b   : > { %3816 = vmatpush1.bf16.msra.mxu1 %v4746_v40  ;;  %v2808_v40 = vld [vmem:[%s6844_s6 + $0x130] sm:$0xff] }
 0x65c   : > { %3817 = vmatprep.subr.bf16.mxu1 %v4763_v41  ;;  %v2816_v41 = vld [vmem:[%s6844_s6 + $0x170] sm:$0xff] }
 0x65d   : > { %v4735_v61 = vcombine.high %v2808_v40, %v2816_v41  ;;  %v4734_v23 = vcombine.low %v2808_v40, %v2816_v41 }
 0x65f   : > { %3818 = vmatpush1.bf16.msra.mxu1 %v4762_v18  ;;  %v2824_v18 = vld [vmem:[%s6844_s6 + $0x1b0] sm:$0xff] }
 0x660   : > { %3819 = vmatprep.subr.bf16.mxu1 %v4779_v22  ;;  %v2832_v22 = vld [vmem:[%s6844_s6 + $0x1f0] sm:$0xff] }
 0x661   : > { %v4751_v27 = vcombine.high %v2824_v18, %v2832_v22  ;;  %v4750_v31 = vcombine.low %v2824_v18, %v2832_v22 }
 0x663   : > { %3820 = vmatpush1.bf16.msra.mxu1 %v4778_v29  ;;  %v2840_v29 = vld [vmem:[%s6844_s6 + $0x230] sm:$0xff] }
 0x664   : > { %3821 = vmatprep.subr.bf16.mxu1 %v4795_v30  ;;  %v2848_v30 = vld [vmem:[%s6844_s6 + $0x270] sm:$0xff] }
 0x665   : > { %v4767_v32 = vcombine.high %v2840_v29, %v2848_v30  ;;  %v4766_v8 = vcombine.low %v2840_v29, %v2848_v30 }
 0x667   : > { %3822 = vmatpush1.bf16.msra.mxu1 %v4794_v33  ;;  %v2856_v33 = vld [vmem:[%s6844_s6 + $0x2b0] sm:$0xff] }
 0x668   : > { %3823 = vmatprep.subr.bf16.mxu1 %v4811_v4  ;;  %v2864_v4 = vld [vmem:[%s6844_s6 + $0x2f0] sm:$0xff] }
 0x669   : > { %v4783_v10 = vcombine.high %v2856_v33, %v2864_v4  ;;  %v4782_v24 = vcombine.low %v2856_v33, %v2864_v4 }
 0x66b   : > { %3824 = vmatpush1.bf16.msra.mxu1 %v4810_v35  ;;  %v2872_v35 = vld [vmem:[%s6844_s6 + $0x330] sm:$0xff] }
 0x66c   : > { %3825 = vmatprep.subr.bf16.mxu1 %v4827_v42  ;;  %v2880_v42 = vld [vmem:[%s6844_s6 + $0x370] sm:$0xff] }
 0x66d   : > { %v4799_v25 = vcombine.high %v2872_v35, %v2880_v42  ;;  %v4798_v57 = vcombine.low %v2872_v35, %v2880_v42 }
 0x66f   : > { %3826 = vmatpush1.bf16.msra.mxu1 %v4826_v26  ;;  %v2888_v26 = vld [vmem:[%s6844_s6 + $0x3b0] sm:$0xff] }
 0x670   : > { %3852 = vmatprep.subr.bf16.mxu1 %v4701_v28  ;;  %v2896_v28 = vld [vmem:[%s6844_s6 + $0x3f0] sm:$0xff] }
 0x671   : > { %v4814_v44 = vcombine.low %v2888_v26, %v2896_v28 }
 0x672   : > { %3842 = vmatmul.mubr.bf16.vlgmr.msra.gmra.mrb[60].mxu1 %v6426_v3 }
 0x673   : > { %3853 = vmatpush1.bf16.msra.mxu1 %v4700_v63  ;;  %4839 = vmatprep.mubr.msk.bf16.mxu1 %vm2721_vm5, %v6428_v21  ;;  %v4815_v63 = vcombine.high %v2888_v26, %v2896_v28 }
 0x674   : > { %3854 = vmatprep.subr.bf16.mxu1 %v4717_v37  ;;  %v2904_v37 = vld [vmem:[%s6844_s6 + $0x430] sm:$0xff] }
 0x677   : > { %3855 = vmatpush1.bf16.msra.mxu1 %v4716_v45  ;;  %v6762_v45 = vshrl.u32 %v3981_v62, 7 }
 0x678   : > { %3856 = vmatprep.subr.bf16.mxu1 %v4733_v46  ;;  %v4831_v46 = vcombine.high %v2904_v37, %v2912_v43 }
 0x679   : > { %vm3984_vm6 = vcmp.eq.s32.totalorder %v6762_v45, 0  ;;  %vm3990_vm7 = vcmp.eq.s32.totalorder %v6762_v45, 1  ;;  %vm3996_vm8 = vcmp.eq.s32.totalorder %v6762_v45, 2  ;;  %vm4002_vm9 = vcmp.eq.s32.totalorder %v6762_v45, 3 }
 0x67a   : > { %vm4008_vm10 = vcmp.eq.s32.totalorder %v6762_v45, 4  ;;  %vm4014_vm11 = vcmp.eq.s32.totalorder %v6762_v45, 5  ;;  %vm4020_vm12 = vcmp.eq.s32.totalorder %v6762_v45, 6  ;;  %vm4026_vm13 = vcmp.eq.s32.totalorder %v6762_v45, 7 }
 0x67b   : > { %3857 = vmatpush1.bf16.msra.mxu1 %v4732_v49  ;;  %v4830_v49 = vcombine.low %v2904_v37, %v2912_v43 }
 0x67c   : > { %3858 = vmatprep.subr.bf16.mxu1 %v4749_v50  ;;  %v4705_v50 = vcombine.high %v2777_v47, %v2785_v48 }
 0x67f   : > { %3859 = vmatpush1.bf16.msra.mxu1 %v4748_v19  ;;  %v2801_v19 = vld [vmem:[%s6844_s6 + $0xf8] sm:$0xff] }
 0x680   : > { %3860 = vmatprep.subr.bf16.mxu1 %v4765_v58  ;;  %v4720_v60 = vcombine.low %v2793_v52, %v2801_v19 }
 0x683   : > { %3861 = vmatpush1.bf16.msra.mxu1 %v4764_v11 }
 0x684   : > { %3862 = vmatprep.subr.bf16.mxu1 %v4781_v13  ;;  %v4704_v13 = vcombine.low %v2777_v47, %v2785_v48 }
 0x687   : > { %3863 = vmatpush1.bf16.msra.mxu1 %v4780_v55  ;;  %v4721_v55 = vcombine.high %v2793_v52, %v2801_v19  ;;  %v3983_v52 = vadd.s32 8, %v6762_v45 }
 0x688   : > { %3864 = vmatprep.subr.bf16.mxu1 %v4797_v15  ;;  %v2809_v15 = vld [vmem:[%s6844_s6 + $0x138] sm:$0xff] }
 0x689   : > { %v4736_v14 = vcombine.low %v2809_v15, %v2817_v20  ;;  %vm4033_vm14 = vcmp.eq.s32.totalorder %v3983_v52, 8  ;;  %vm4039_vm15 = vcmp.eq.s32.totalorder %v3983_v52, 9  ;;  %vm4045_vm0 = vcmp.eq.s32.totalorder %v3983_v52, 10 }
 0x68a   : > { %vm4051_vm1 = vcmp.eq.s32.totalorder %v3983_v52, 11  ;;  %vm4057_vm2 = vcmp.eq.s32.totalorder %v3983_v52, 12  ;;  %vm4063_vm3 = vcmp.eq.s32.totalorder %v3983_v52, 13  ;;  %vm4069_vm4 = vcmp.eq.s32.totalorder %v3983_v52, 14 }
 0x68b   : > { %3865 = vmatpush1.bf16.msra.mxu1 %v4796_v2  ;;  %v4737_v2 = vcombine.high %v2809_v15, %v2817_v20 }
 0x68c   : > { %3866 = vmatprep.subr.bf16.mxu1 %v4813_v9  ;;  %v2825_v9 = vld [vmem:[%s6844_s6 + $0x1b8] sm:$0xff] }
 0x68d   : > { %v4752_v0 = vcombine.low %v2825_v9, %v2833_v12 }
 0x68f   : > { %3867 = vmatpush1.bf16.msra.mxu1 %v4812_v16  ;;  %v4753_v16 = vcombine.high %v2825_v9, %v2833_v12 }
 0x690   : > { %3868 = vmatprep.subr.bf16.mxu1 %v4829_v36  ;;  %v2841_v36 = vld [vmem:[%s6844_s6 + $0x238] sm:$0xff] }
 0x693   : > { %3869 = vmatpush1.bf16.msra.mxu1 %v4828_v39  ;;  %v2857_v39 = vld [vmem:[%s6844_s6 + $0x2b8] sm:$0xff] }
 0x694   : > { %3895 = vmatprep.subr.bf16.mxu1 %v4703_v1  ;;  %v2865_v1 = vld [vmem:[%s6844_s6 + $0x2f8] sm:$0xff] }
 0x695   : > { %v4785_v6 = vcombine.high %v2857_v39, %v2865_v1  ;;  %v4784_v40 = vcombine.low %v2857_v39, %v2865_v1 }
 0x696   : > { %3885 = vmatmul.mubr.bf16.vlgmr.msra.gmra.mrb[64].mxu1 %v6426_v3 }
 0x697   : > { %3896 = vmatpush1.bf16.msra.mxu1 %v4702_v17  ;;  %4840 = vmatprep.mubr.msk.bf16.mxu1 %vm2721_vm5, %v6428_v21  ;;  %v2873_v17 = vld [vmem:[%s6844_s6 + $0x338] sm:$0xff] }
 0x698   : > { %3897 = vmatprep.subr.bf16.mxu1 %v4719_v34  ;;  %v2881_v34 = vld [vmem:[%s6844_s6 + $0x378] sm:$0xff] }
 0x699   : > { %v4801_v41 = vcombine.high %v2873_v17, %v2881_v34  ;;  %v4800_v18 = vcombine.low %v2873_v17, %v2881_v34 }
 0x69b   : > { %3898 = vmatpush1.bf16.msra.mxu1 %v4718_v56  ;;  %v2889_v56 = vld [vmem:[%s6844_s6 + $0x3b8] sm:$0xff] }
 0x69c   : > { %3899 = vmatprep.subr.bf16.mxu1 %v4735_v61  ;;  %v2897_v61 = vld [vmem:[%s6844_s6 + $0x3f8] sm:$0xff] }
 0x69d   : > { %v4817_v22 = vcombine.high %v2889_v56, %v2897_v61  ;;  %v4816_v29 = vcombine.low %v2889_v56, %v2897_v61 }
 0x69f   : > { %3900 = vmatpush1.bf16.msra.mxu1 %v4734_v23  ;;  %v2905_v23 = vld [vmem:[%s6844_s6 + $0x438] sm:$0xff] }
 0x6a0   : > { %3901 = vmatprep.subr.bf16.mxu1 %v4751_v27  ;;  %v2913_v27 = vld [vmem:[%s6844_s6 + $0x478] sm:$0xff] }
 0x6a1   : > { %v4833_v30 = vcombine.high %v2905_v23, %v2913_v27 }
 0x6a3   : > { %3902 = vmatpush1.bf16.msra.mxu1 %v4750_v31  ;;  %v4832_v31 = vcombine.low %v2905_v23, %v2913_v27 }
 0x6a4   : > { %3903 = vmatprep.subr.bf16.mxu1 %v4767_v32 }
 0x6a7   : > { %3904 = vmatpush1.bf16.msra.mxu1 %v4766_v8 }
 0x6a8   : > { %3905 = vmatprep.subr.bf16.mxu1 %v4783_v10 }
 0x6ab   : > { %3906 = vmatpush1.bf16.msra.mxu1 %v4782_v24 }
 0x6ac   : > { %3907 = vmatprep.subr.bf16.mxu1 %v4799_v25 }
 0x6af   : > { %3908 = vmatpush1.bf16.msra.mxu1 %v4798_v57 }
 0x6b0   : > { %3909 = vmatprep.subr.bf16.mxu1 %v4815_v63 }
 0x6b3   : > { %3910 = vmatpush1.bf16.msra.mxu1 %v4814_v44 }
 0x6b4   : > { %3911 = vmatprep.subr.bf16.mxu1 %v4831_v46 }
 0x6b5   : > { %v3671_v51 = vpop.f32.mrb[44].mxu1 }
 0x6b6   : > { %v3986_v58 = vsel %vm3984_vm6, %v3671_v51, 0.0  ;;  %v3673_v59 = vpop.f32.mrb[45].mxu1 }
 0x6b7   : > { %v3992_v7 = vsel %vm3990_vm7, %v3673_v59, 0.0  ;;  %3912 = vmatpush1.bf16.msra.mxu1 %v4830_v49  ;;  %v3675_v11 = vpop.f32.mrb[46].mxu1 }
 0x6b8   : > { %v3994_v53 = vadd.f32 %v3992_v7, %v3986_v58  ;;  %v3677_v54 = vpop.f32.mrb[47].mxu1  ;;  %3938 = vmatprep.subr.bf16.mxu1 %v4705_v50 }
 0x6ba   : > { %3928 = vmatmul.mubr.bf16.vlgmr.msra.gmra.mrb[68].mxu1 %v6426_v3 }
 0x6bb   : > { %3939 = vmatpush1.bf16.msra.mxu1 %v4704_v13  ;;  %4841 = vmatprep.mubr.msk.bf16.mxu1 %vm2721_vm5, %v6428_v21  ;;  %v2849_v21 = vld [vmem:[%s6844_s6 + $0x278] sm:$0xff]  ;;  %vm4075_vm5 = vcmp.eq.s32.totalorder %v3983_v52, 15 }
 0x6bc   : > { %3940 = vmatprep.subr.bf16.mxu1 %v4721_v55  ;;  %v4769_v38 = vcombine.high %v2841_v36, %v2849_v21  ;;  %v4768_v5 = vcombine.low %v2841_v36, %v2849_v21 }
 0x6bf   : > { %3941 = vmatpush1.bf16.msra.mxu1 %v4720_v60 }
 0x6c0   : > { %3942 = vmatprep.subr.bf16.mxu1 %v4737_v2 }
 0x6c3   : > { %3943 = vmatpush1.bf16.msra.mxu1 %v4736_v14 }
 0x6c4   : > { %3944 = vmatprep.subr.bf16.mxu1 %v4753_v16 }
 0x6c7   : > { %3945 = vmatpush1.bf16.msra.mxu1 %v4752_v0 }
 0x6c8   : > { %3946 = vmatprep.subr.bf16.mxu1 %v4769_v38 }
 0x6cb   : > { %3947 = vmatpush1.bf16.msra.mxu1 %v4768_v5 }
 0x6cc   : > { %3948 = vmatprep.subr.bf16.mxu1 %v4785_v6 }
 0x6cf   : > { %3949 = vmatpush1.bf16.msra.mxu1 %v4784_v40 }
 0x6d0   : > { %3950 = vmatprep.subr.bf16.mxu1 %v4801_v41 }
 0x6d3   : > { %3951 = vmatpush1.bf16.msra.mxu1 %v4800_v18 }
 0x6d4   : > { %3952 = vmatprep.subr.bf16.mxu1 %v4817_v22 }
 0x6d7   : > { %3953 = vmatpush1.bf16.msra.mxu1 %v4816_v29 }
 0x6d8   : > { %3954 = vmatprep.subr.bf16.mxu1 %v4833_v30 }
 0x6d9   : > { %v3714_v32 = vpop.f32.mrb[48].mxu1 }
 0x6da   : > { %v3998_v33 = vsel %vm3996_vm8, %v3714_v32, 0.0  ;;  %v3716_v4 = vpop.f32.mrb[49].mxu1 }
 0x6db   : > { %v4000_v8 = vadd.f32 %v3998_v33, %v3994_v53  ;;  %v4004_v10 = vsel %vm4002_vm9, %v3716_v4, 0.0  ;;  %v3718_v35 = vpop.f32.mrb[50].mxu1  ;;  %3955 = vmatpush1.bf16.msra.mxu1 %v4832_v31 }
 0x6dc   : > { %v3720_v42 = vpop.f32.mrb[51].mxu1 }
 0x6dd   : > { %v4006_v24 = vadd.f32 %v4004_v10, %v4000_v8 }
 0x6de   : > { %3971 = vmatmul.mubr.bf16.vlgmr.msra.gmra.mrb[72].mxu1 %v6426_v3 }
 0x6fd   : > { %v3757_v25 = vpop.f32.mrb[52].mxu1 }
 0x6fe   : > { %v4010_v26 = vsel %vm4008_vm10, %v3757_v25, 0.0  ;;  %v3759_v28 = vpop.f32.mrb[53].mxu1 }
 0x6ff   : > { %v4012_v57 = vadd.f32 %v4010_v26, %v4006_v24  ;;  %v4016_v62 = vsel %vm4014_vm11, %v3759_v28, 0.0  ;;  %v3761_v63 = vpop.f32.mrb[54].mxu1 }
 0x700   : > { %v3763_v37 = vpop.f32.mrb[55].mxu1 }
 0x701   : > { %v4018_v43 = vadd.f32 %v4016_v62, %v4012_v57 }
 0x721   : > { %v3800_v44 = vpop.f32.mrb[56].mxu1 }
 0x722   : > { %v4022_v46 = vsel %vm4020_vm12, %v3800_v44, 0.0  ;;  %v3802_v47 = vpop.f32.mrb[57].mxu1 }
 0x723   : > { %v4024_v3 = vadd.f32 %v4022_v46, %v4018_v43  ;;  %v4028_v48 = vsel %vm4026_vm13, %v3802_v47, 0.0  ;;  %v3804_v49 = vpop.f32.mrb[58].mxu1 }
 0x724   : > { %v3806_v50 = vpop.f32.mrb[59].mxu1 }
 0x725   : > { %v4030_v51 = vadd.f32 %v4028_v48, %v4024_v3 }
 0x745   : > { %v3843_v19 = vpop.f32.mrb[60].mxu1 }
 0x746   : > { %v3845_v58 = vpop.f32.mrb[61].mxu1 }
 0x747   : > { %v3847_v59 = vpop.f32.mrb[62].mxu1 }
 0x748   : > { %v4035_v7 = vsel %vm4033_vm14, %v3847_v59, 0.0  ;;  %v3849_v11 = vpop.f32.mrb[63].mxu1 }
 0x749   : > { %v4041_v13 = vsel %vm4039_vm15, %v3849_v11, 0.0 }
 0x74a   : > { %v4043_v53 = vadd.f32 %v4041_v13, %v4035_v7 }
 0x769   : > { %v3886_v54 = vpop.f32.mrb[64].mxu1 }
 0x76a   : > { %v3888_v55 = vpop.f32.mrb[65].mxu1 }
 0x76b   : > { %v3890_v15 = vpop.f32.mrb[66].mxu1 }
 0x76c   : > { %v4047_v20 = vsel %vm4045_vm0, %v3890_v15, 0.0  ;;  %v3892_v60 = vpop.f32.mrb[67].mxu1 }
 0x76d   : > { %v4049_v2 = vadd.f32 %v4047_v20, %v4043_v53  ;;  %v4053_v9 = vsel %vm4051_vm1, %v3892_v60, 0.0 }
 0x76f   : > { %v4055_v12 = vadd.f32 %v4053_v9, %v4049_v2 }
 0x78d   : > { %v3929_v45 = vpop.f32.mrb[68].mxu1 }
 0x78e   : > { %v3931_v14 = vpop.f32.mrb[69].mxu1 }
 0x78f   : > { %v3933_v16 = vpop.f32.mrb[70].mxu1 }
 0x790   : > { %v4059_v36 = vsel %vm4057_vm2, %v3933_v16, 0.0  ;;  %v3935_v21 = vpop.f32.mrb[71].mxu1 }
 0x791   : > { %v4061_v0 = vadd.f32 %v4059_v36, %v4055_v12  ;;  %v4065_v38 = vsel %vm4063_vm3, %v3935_v21, 0.0 }
 0x793   : > { %v4067_v39 = vadd.f32 %v4065_v38, %v4061_v0 }
 0x7b1   : > { %v3972_v1 = vpop.f32.mrb[72].mxu1 }
 0x7b2   : > { %v3974_v5 = vpop.f32.mrb[73].mxu1 }
 0x7b3   : > { %v3976_v6 = vpop.f32.mrb[74].mxu1 }
 0x7b4   : > { %v4071_v17 = vsel %vm4069_vm4, %v3976_v6, 0.0  ;;  %v3978_v34 = vpop.f32.mrb[75].mxu1 }
 0x7b5   : > { %v4073_v40 = vadd.f32 %v4071_v17, %v4067_v39  ;;  %v4077_v41 = vsel %vm4075_vm5, %v3978_v34, 0.0 }
 0x7b7   : > { %v4079_v56 = vadd.f32 %v4077_v41, %v4073_v40 }
 0x7b9   : > { %v4080_v61 = vadd.f32 %v4079_v56, %v4030_v51 }
 0x7bb   : > { %v4081_v18 = vrot.slane %v4080_v61, 4 }
 0x7bd   : > { %v4082_v22 = vadd.f32 %v4081_v18, %v4080_v61 }
 0x7bf   : > { %v4083_v23 = vrot.slane %v4082_v22, 2 }
 0x7c1   : > { %v4084_v27 = vadd.f32 %v4083_v23, %v4082_v22 }
 0x7c3   : > { %v4085_v29 = vrot.slane %v4084_v27, 1 }
 0x7c5   : > { %v4086_v30 = vadd.f32 %v4085_v29, %v4084_v27 }
 0x7c7   : > { %v4087_v31 = vmul.f32 0.001, %v4086_v30 }
 0x7c9   : > { %4088 = vst [vmem:[%s274_s29] sm:$0x1] %v4087_v31 }
 0x7ca PF: > { %s17_s24 = sadd.s32 1, %s5308_s24  }
 0x7cb   : > { %p14_p4 = scmp.ge.s32.totalorder %s17_s24, 4  }
 0x7cd   :  { %16 = sbr.rel (!%p14_p4) target bundleno = 1 (0x1), region = 86 }

</bundles_post_ra>
